<compile_context>
chip_gen: v7x
topology: tpu7x:2x2x1
jax: 0.10.0
libtpu: 0.0.40
codegen_flags: <defaults>
</compile_context>

<pallas_src>
import functools
import math

import jax
import jax.numpy as jnp
from jax.experimental import pallas as pl
from jax.experimental.pallas import tpu as pltpu


# ----------------------------- Pallas kernel ------------------------------ #
def _encoder_layer_kernel(x_ref,
                          wq_ref, bq_ref, wk_ref, bk_ref, wv_ref, bv_ref,
                          wo_ref, bo_ref,
                          w1_ref, b1_ref, w2_ref, b2_ref,
                          g1_ref, be1_ref, g2_ref, be2_ref,
                          out_ref,
                          *, num_heads, head_dim, block_b, seq_len):
    f32 = jnp.float32
    embed = num_heads * head_dim
    m_rows = block_b * seq_len
    x2d = x_ref[...]                                     # (M, E), rows ordered (b, t)
    mxu_dtype = wq_ref.dtype                             # bf16 by default

    def linear(v, w_ref, b_ref):
        # weights stored (in, out) in the MXU dtype; bias (1, out) f32; f32 acc.
        w = w_ref[...]
        return jnp.dot(v.astype(w.dtype), w, preferred_element_type=f32) + b_ref[...]

    # --- QKV projections on the whole slab (big-M bf16 MXU matmuls) -------- #
    scale = 1.0 / math.sqrt(head_dim)
    q2d = linear(x2d, wq_ref, bq_ref) * scale            # scale folded into q once
    k2d = linear(x2d, wk_ref, bk_ref)
    v2d = linear(x2d, wv_ref, bv_ref)

    q3 = q2d.reshape(block_b, seq_len, embed)
    k3 = k2d.reshape(block_b, seq_len, embed)
    v3 = v2d.reshape(block_b, seq_len, embed)

    # --- attention with fused out-projection (no attn scratch, no masked
    #     sub-128-lane stores): attn_out accumulates ctx_h @ wo[rows of head h].
    attn_out = jnp.broadcast_to(bo_ref[...], (m_rows, embed)).astype(f32)
    for h in range(num_heads):                           # static unroll (small H)
        sl = slice(h * head_dim, (h + 1) * head_dim)
        qh = q3[:, :, sl].astype(mxu_dtype)              # (BB, T, Dh)
        kh = k3[:, :, sl].astype(mxu_dtype)
        vh = v3[:, :, sl].astype(mxu_dtype)
        s = jnp.einsum('bqd,bkd->bqk', qh, kh,
                       preferred_element_type=f32)       # (BB, T, T), f32 acc
        # softmax kept in f32 (v5e has no bf16 VPU/EUP); reciprocal on EUP slot.
        s = s - jnp.max(s, axis=-1, keepdims=True)
        p = jnp.exp(s)
        p = p * pl.reciprocal(jnp.sum(p, axis=-1, keepdims=True), approx=True)
        ctx = jnp.einsum('bqk,bkd->bqd', p.astype(mxu_dtype), vh,
                         preferred_element_type=f32)     # (BB, T, Dh)
        attn_out = attn_out + jnp.dot(
            ctx.reshape(m_rows, head_dim).astype(mxu_dtype), wo_ref[sl, :],
            preferred_element_type=f32)                  # (M, E)

    def layer_norm(val, g_ref, b_ref):
        mu = jnp.mean(val, axis=-1, keepdims=True)
        var = jnp.mean((val - mu) ** 2, axis=-1, keepdims=True)
        return (val - mu) * jax.lax.rsqrt(var + 1e-5) * g_ref[...] + b_ref[...]

    # --- residual + norm1, FFN, residual + norm2 --------------------------- #
    y = layer_norm(x2d + attn_out, g1_ref, be1_ref)      # (M, E), f32
    hmid = jnp.maximum(linear(y, w1_ref, b1_ref), 0.0)   # (M, F), f32
    ffn = linear(hmid, w2_ref, b2_ref)                   # (M, E), f32
    out_ref[...] = layer_norm(y + ffn, g2_ref, be2_ref)


# ------------------------------ wrapper ------------------------------------ #
def _vmem_capacity_bytes():
    try:
        cap = getattr(pltpu.get_tpu_info(), "vmem_capacity_bytes", None)
        if cap:
            return int(cap)
    except Exception:
        pass
    return 128 * 2 ** 20


def _choose_block_batches(batch, seq_len, target_rows, min_grid_steps=2):
    """Batches folded into one grid step's matmul M dimension.

    Constraints: block_b divides batch and block_b*seq_len is 8-aligned (or the
    block covers the whole batch).  Prefers >= 2 grid steps (v7x dual-TC), then
    the largest block fitting target_rows; when one sequence alone exceeds
    target_rows it falls back to the smallest valid block instead of degenerating
    to the full batch."""
    cands = [d for d in range(1, batch + 1)
             if batch % d == 0 and ((d * seq_len) % 8 == 0 or d == batch)]

    def pick(cs):
        fitting = [d for d in cs if d * seq_len <= target_rows]
        return max(fitting) if fitting else min(cs)

    multi = [d for d in cands if batch // d >= min_grid_steps]
    return pick(multi) if multi else pick(cands)


def transformer_encoder_layer(x_tbe, params, num_heads, *,
                              matmul_dtype=jnp.bfloat16, target_rows=None):
    """x_tbe: (T, B, E) float32, PyTorch convention. Returns (T, B, E) float32."""
    T, B, E = x_tbe.shape
    head_dim = E // num_heads
    F = params["w1"].shape[1]

    vmem_cap = _vmem_capacity_bytes()
    if target_rows is None:
        # Bigger M blocks on 128 MiB chips (v5e/v6e); conservative on v7x (64 MiB).
        target_rows = 512 if vmem_cap >= 100 * 2 ** 20 else 256

    block_b = _choose_block_batches(B, T, target_rows)
    block_m = block_b * T
    grid = (B // block_b,)

    # (T, B, E) -> (B, T, E) -> lane-dense (B*T, E) slab (layout plumbing in XLA).
    x2d = jnp.transpose(x_tbe, (1, 0, 2)).reshape(B * T, E)

    # Weight matrices held in the MXU dtype (bf16 default); f32 accumulation in-kernel.
    def w(name):
        return params[name].astype(matmul_dtype)

    weight_args = (w("wq"), params["bq"], w("wk"), params["bk"],
                   w("wv"), params["bv"], w("wo"), params["bo"],
                   w("w1"), params["b1"], w("w2"), params["b2"],
                   params["g1"], params["be1"], params["g2"], params["be2"])

    # Whole-array VMEM residency: one copy per weight, no double buffering.
    wspec = pl.BlockSpec(memory_space=pltpu.MemorySpace.VMEM)
    in_specs = [pl.BlockSpec((block_m, E), lambda i: (i, 0))] + [wspec] * 16

    kernel = functools.partial(_encoder_layer_kernel,
                               num_heads=num_heads, head_dim=head_dim,
                               block_b=block_b, seq_len=T)

    # Explicit, generation-aware VMEM budget: single-buffered weights +
    # double-buffered x/out blocks + in-flight activations (q/k/v and their bf16
    # casts, attn accumulator, y, FFN hidden) + per-head softmax logits, plus
    # headroom for compiler-internal scratch; capped at ~85% of physical VMEM.
    weight_bytes = sum(int(a.size) * a.dtype.itemsize for a in weight_args)
    act_bytes = 4 * (4 * block_m * E            # 2x-buffered x and out blocks
                     + 8 * block_m * E          # q/k/v (+ casts), attn acc, y
                     + 3 * block_m * F          # FFN hidden (f32 + cast + relu)
                     + 4 * block_b * T * T)     # softmax logits working set (s, p)
    vmem_limit = weight_bytes + act_bytes + 8 * 2 ** 20
    vmem_limit = int(min(max(vmem_limit, 32 * 2 ** 20), 0.85 * vmem_cap))

    out2d = pl.pallas_call(
        kernel,
        out_shape=jax.ShapeDtypeStruct((B * T, E), jnp.float32),
        grid_spec=pltpu.PrefetchScalarGridSpec(
            num_scalar_prefetch=0,
            grid=grid,
            in_specs=in_specs,
            out_specs=pl.BlockSpec((block_m, E), lambda i: (i, 0)),
        ),
        compiler_params=pltpu.CompilerParams(
            dimension_semantics=("parallel",),
            vmem_limit_bytes=vmem_limit),
    )(x2d, *weight_args)

    return out2d.reshape(B, T, E).transpose(1, 0, 2)      # back to (T, B, E)


# --------------------------- pure-JAX reference ---------------------------- #
def _reference(x_tbe, params, num_heads):
    T, B, E = x_tbe.shape
    Dh = E // num_heads

    def lin(v, w, b):
        return v @ w + b[0]

    q = lin(x_tbe, params["wq"], params["bq"])
    k = lin(x_tbe, params["wk"], params["bk"])
    v = lin(x_tbe, params["wv"], params["bv"])
    q = q.reshape(T, B, num_heads, Dh).transpose(1, 2, 0, 3)
    k = k.reshape(T, B, num_heads, Dh).transpose(1, 2, 0, 3)
    v = v.reshape(T, B, num_heads, Dh).transpose(1, 2, 0, 3)
    logits = jnp.einsum("bhqd,bhkd->bhqk", q, k) / jnp.sqrt(jnp.float32(Dh))
    attn = jax.nn.softmax(logits, axis=-1)
    o = jnp.einsum("bhqk,bhkd->bhqd", attn, v)
    o = o.transpose(2, 0, 1, 3).reshape(T, B, E)
    attn_out = lin(o, params["wo"], params["bo"])

    def ln(val, g, b):
        mu = jnp.mean(val, -1, keepdims=True)
        var = jnp.mean((val - mu) ** 2, -1, keepdims=True)
        return (val - mu) * jax.lax.rsqrt(var + 1e-5) * g[0] + b[0]

    y = ln(x_tbe + attn_out, params["g1"], params["be1"])
    f = lin(jnp.maximum(lin(y, params["w1"], params["b1"]), 0.0),
            params["w2"], params["b2"])
    return ln(y + f, params["g2"], params["be2"])


# ------------------------------ param init --------------------------------- #
def init_params(key, embed_dim, ffn_dim):
    keys = jax.random.split(key, 8)

    def xavier(k, fan_in, fan_out):
        lim = jnp.sqrt(6.0 / (fan_in + fan_out))
        return jax.random.uniform(k, (fan_in, fan_out), jnp.float32, -lim, lim)

    def torch_linear(k, fan_in, fan_out):
        kw, kb = jax.random.split(k)
        lim = 1.0 / jnp.sqrt(jnp.float32(fan_in))
        w = jax.random.uniform(kw, (fan_in, fan_out), jnp.float32, -lim, lim)
        b = jax.random.uniform(kb, (1, fan_out), jnp.float32, -lim, lim)
        return w, b

    E, F = embed_dim, ffn_dim
    w1, b1 = torch_linear(keys[4], E, F)
    w2, b2 = torch_linear(keys[5], F, E)
    return {
        "wq": xavier(keys[0], E, E), "bq": jnp.zeros((1, E), jnp.float32),
        "wk": xavier(keys[1], E, E), "bk": jnp.zeros((1, E), jnp.float32),
        "wv": xavier(keys[2], E, E), "bv": jnp.zeros((1, E), jnp.float32),
        "wo": xavier(keys[3], E, E), "bo": jnp.zeros((1, E), jnp.float32),
        "w1": w1, "b1": b1, "w2": w2, "b2": b2,
        "g1": jnp.ones((1, E), jnp.float32), "be1": jnp.zeros((1, E), jnp.float32),
        "g2": jnp.ones((1, E), jnp.float32), "be2": jnp.zeros((1, E), jnp.float32),
    }


if __name__ == "__main__":
    SEQ, BATCH, EMBED, HEADS, FFN = 8, 2, 32, 4, 64

    key = jax.random.PRNGKey(0)
    k_x, k_p = jax.random.split(key)
    x = jax.random.normal(k_x, (SEQ, BATCH, EMBED), jnp.float32)
    params = init_params(k_p, EMBED, FFN)

    out = transformer_encoder_layer(x, params, HEADS)
    out = jax.block_until_ready(out)

    ref = _reference(x, params, HEADS)
    assert out.shape == (SEQ, BATCH, EMBED)
    # 5e-2 tolerance: bf16 MXU operands (f32 accumulation) plus the approx
    # softmax reciprocal; everything else (softmax/LN/residual) is exact f32.
    assert jnp.allclose(out, ref, rtol=5e-2, atol=5e-2), "mismatch vs reference"
    print("KERNEL_OK")
</pallas_src>

<mosaic_0001>
module attributes {stable_mosaic.version = 11 : i64} {
  func.func @_encoder_layer_kernel(%arg0: i32, %arg1: memref<8x32xf32, #tpu.memory_space<vmem>>, %arg2: memref<32x32xbf16, #tpu.memory_space<vmem>>, %arg3: memref<1x32xf32, #tpu.memory_space<vmem>>, %arg4: memref<32x32xbf16, #tpu.memory_space<vmem>>, %arg5: memref<1x32xf32, #tpu.memory_space<vmem>>, %arg6: memref<32x32xbf16, #tpu.memory_space<vmem>>, %arg7: memref<1x32xf32, #tpu.memory_space<vmem>>, %arg8: memref<32x32xbf16, #tpu.memory_space<vmem>>, %arg9: memref<1x32xf32, #tpu.memory_space<vmem>>, %arg10: memref<32x64xbf16, #tpu.memory_space<vmem>>, %arg11: memref<1x64xf32, #tpu.memory_space<vmem>>, %arg12: memref<64x32xbf16, #tpu.memory_space<vmem>>, %arg13: memref<1x32xf32, #tpu.memory_space<vmem>>, %arg14: memref<1x32xf32, #tpu.memory_space<vmem>>, %arg15: memref<1x32xf32, #tpu.memory_space<vmem>>, %arg16: memref<1x32xf32, #tpu.memory_space<vmem>>, %arg17: memref<1x32xf32, #tpu.memory_space<vmem>>, %arg18: memref<8x32xf32, #tpu.memory_space<vmem>>) attributes {dimension_semantics = [#tpu.dimension_semantics<parallel>], iteration_bounds = array<i64: 2>, scalar_prefetch = 0 : i64, scratch_operands = 0 : i64, tpu.core_type = #tpu.core_type<tc>, window_params = [{transform_indices = @transform_0, window_bounds = array<i64: 8, 32>}, {pipeline_mode = #tpu.pipeline_mode<synchronous>, transform_indices = @transform_1, window_bounds = array<i64: 32, 32>}, {pipeline_mode = #tpu.pipeline_mode<synchronous>, transform_indices = @transform_2, window_bounds = array<i64: 1, 32>}, {pipeline_mode = #tpu.pipeline_mode<synchronous>, transform_indices = @transform_3, window_bounds = array<i64: 32, 32>}, {pipeline_mode = #tpu.pipeline_mode<synchronous>, transform_indices = @transform_4, window_bounds = array<i64: 1, 32>}, {pipeline_mode = #tpu.pipeline_mode<synchronous>, transform_indices = @transform_5, window_bounds = array<i64: 32, 32>}, {pipeline_mode = #tpu.pipeline_mode<synchronous>, transform_indices = @transform_6, window_bounds = array<i64: 1, 32>}, {pipeline_mode = #tpu.pipeline_mode<synchronous>, transform_indices = @transform_7, window_bounds = array<i64: 32, 32>}, {pipeline_mode = #tpu.pipeline_mode<synchronous>, transform_indices = @transform_8, window_bounds = array<i64: 1, 32>}, {pipeline_mode = #tpu.pipeline_mode<synchronous>, transform_indices = @transform_9, window_bounds = array<i64: 32, 64>}, {pipeline_mode = #tpu.pipeline_mode<synchronous>, transform_indices = @transform_10, window_bounds = array<i64: 1, 64>}, {pipeline_mode = #tpu.pipeline_mode<synchronous>, transform_indices = @transform_11, window_bounds = array<i64: 64, 32>}, {pipeline_mode = #tpu.pipeline_mode<synchronous>, transform_indices = @transform_12, window_bounds = array<i64: 1, 32>}, {pipeline_mode = #tpu.pipeline_mode<synchronous>, transform_indices = @transform_13, window_bounds = array<i64: 1, 32>}, {pipeline_mode = #tpu.pipeline_mode<synchronous>, transform_indices = @transform_14, window_bounds = array<i64: 1, 32>}, {pipeline_mode = #tpu.pipeline_mode<synchronous>, transform_indices = @transform_15, window_bounds = array<i64: 1, 32>}, {pipeline_mode = #tpu.pipeline_mode<synchronous>, transform_indices = @transform_16, window_bounds = array<i64: 1, 32>}, {transform_indices = @transform_17, window_bounds = array<i64: 8, 32>}]} {
    %c0 = arith.constant 0 : index
    %c0_0 = arith.constant 0 : index
    %0 = vector.load %arg1[%c0, %c0_0] : memref<8x32xf32, #tpu.memory_space<vmem>>, vector<8x32xf32>
    %c0_1 = arith.constant 0 : index
    %c0_2 = arith.constant 0 : index
    %1 = vector.load %arg2[%c0_1, %c0_2] : memref<32x32xbf16, #tpu.memory_space<vmem>>, vector<32x32xbf16>
    %2 = arith.truncf %0 : vector<8x32xf32> to vector<8x32xbf16>
    %cst = arith.constant dense<0.000000e+00> : vector<8x32xf32>
    %3 = tpu.matmul %2, %1, %cst {dimension_numbers = #tpu.dot_dimension_numbers<[1], [0], [0], [1], [0, 0, 1, 1], [], []>} : vector<8x32xbf16>, vector<32x32xbf16>, vector<8x32xf32> -> vector<8x32xf32>
    %c0_3 = arith.constant 0 : index
    %c0_4 = arith.constant 0 : index
    %4 = vector.load %arg3[%c0_3, %c0_4] : memref<1x32xf32, #tpu.memory_space<vmem>>, vector<1x32xf32>
    %5 = vector.broadcast %4 : vector<1x32xf32> to vector<8x32xf32>
    %6 = arith.addf %3, %5 : vector<8x32xf32>
    %cst_5 = arith.constant 0.353553385 : f32
    %7 = vector.broadcast %cst_5 : f32 to vector<8x32xf32>
    %8 = arith.mulf %6, %7 : vector<8x32xf32>
    %c0_6 = arith.constant 0 : index
    %c0_7 = arith.constant 0 : index
    %9 = vector.load %arg4[%c0_6, %c0_7] : memref<32x32xbf16, #tpu.memory_space<vmem>>, vector<32x32xbf16>
    %10 = arith.truncf %0 : vector<8x32xf32> to vector<8x32xbf16>
    %cst_8 = arith.constant dense<0.000000e+00> : vector<8x32xf32>
    %11 = tpu.matmul %10, %9, %cst_8 {dimension_numbers = #tpu.dot_dimension_numbers<[1], [0], [0], [1], [0, 0, 1, 1], [], []>} : vector<8x32xbf16>, vector<32x32xbf16>, vector<8x32xf32> -> vector<8x32xf32>
    %c0_9 = arith.constant 0 : index
    %c0_10 = arith.constant 0 : index
    %12 = vector.load %arg5[%c0_9, %c0_10] : memref<1x32xf32, #tpu.memory_space<vmem>>, vector<1x32xf32>
    %13 = vector.broadcast %12 : vector<1x32xf32> to vector<8x32xf32>
    %14 = arith.addf %11, %13 : vector<8x32xf32>
    %c0_11 = arith.constant 0 : index
    %c0_12 = arith.constant 0 : index
    %15 = vector.load %arg6[%c0_11, %c0_12] : memref<32x32xbf16, #tpu.memory_space<vmem>>, vector<32x32xbf16>
    %16 = arith.truncf %0 : vector<8x32xf32> to vector<8x32xbf16>
    %cst_13 = arith.constant dense<0.000000e+00> : vector<8x32xf32>
    %17 = tpu.matmul %16, %15, %cst_13 {dimension_numbers = #tpu.dot_dimension_numbers<[1], [0], [0], [1], [0, 0, 1, 1], [], []>} : vector<8x32xbf16>, vector<32x32xbf16>, vector<8x32xf32> -> vector<8x32xf32>
    %c0_14 = arith.constant 0 : index
    %c0_15 = arith.constant 0 : index
    %18 = vector.load %arg7[%c0_14, %c0_15] : memref<1x32xf32, #tpu.memory_space<vmem>>, vector<1x32xf32>
    %19 = vector.broadcast %18 : vector<1x32xf32> to vector<8x32xf32>
    %20 = arith.addf %17, %19 : vector<8x32xf32>
    %21 = vector.shape_cast %8 : vector<8x32xf32> to vector<1x8x32xf32>
    %22 = vector.shape_cast %14 : vector<8x32xf32> to vector<1x8x32xf32>
    %23 = vector.shape_cast %20 : vector<8x32xf32> to vector<1x8x32xf32>
    %c0_16 = arith.constant 0 : index
    %c0_17 = arith.constant 0 : index
    %24 = vector.load %arg9[%c0_16, %c0_17] : memref<1x32xf32, #tpu.memory_space<vmem>>, vector<1x32xf32>
    %25 = vector.shape_cast %24 : vector<1x32xf32> to vector<1x32xf32>
    %26 = vector.broadcast %25 : vector<1x32xf32> to vector<8x32xf32>
    %27 = vector.extract_strided_slice %21 {offsets = [0, 0, 0], sizes = [1, 8, 8], strides = [1, 1, 1]} : vector<1x8x32xf32> to vector<1x8x8xf32>
    %28 = arith.truncf %27 : vector<1x8x8xf32> to vector<1x8x8xbf16>
    %29 = vector.extract_strided_slice %22 {offsets = [0, 0, 0], sizes = [1, 8, 8], strides = [1, 1, 1]} : vector<1x8x32xf32> to vector<1x8x8xf32>
    %30 = arith.truncf %29 : vector<1x8x8xf32> to vector<1x8x8xbf16>
    %31 = vector.extract_strided_slice %23 {offsets = [0, 0, 0], sizes = [1, 8, 8], strides = [1, 1, 1]} : vector<1x8x32xf32> to vector<1x8x8xf32>
    %32 = arith.truncf %31 : vector<1x8x8xf32> to vector<1x8x8xbf16>
    "tpu.trace_start"() <{level = 10 : i32, message = "bqd,bkd->bqk"}> : () -> ()
    %cst_18 = arith.constant dense<0.000000e+00> : vector<1x8x8xf32>
    %33 = tpu.matmul %28, %30, %cst_18 {dimension_numbers = #tpu.dot_dimension_numbers<[2], [2], [1], [1], [0, 0, 0, 1, 1, 1], [0], [0]>} : vector<1x8x8xbf16>, vector<1x8x8xbf16>, vector<1x8x8xf32> -> vector<1x8x8xf32>
    "tpu.trace_stop"() : () -> ()
    %cst_19 = arith.constant dense<0xFF800000> : vector<1x8xf32>
    %34 = vector.multi_reduction <maximumf>, %33, %cst_19 [2] : vector<1x8x8xf32> to vector<1x8xf32>
    %35 = vector.shape_cast %34 : vector<1x8xf32> to vector<1x8x1xf32>
    %36 = vector.broadcast %35 : vector<1x8x1xf32> to vector<1x8x8xf32>
    %37 = arith.subf %33, %36 : vector<1x8x8xf32>
    %38 = math.exp %37 : vector<1x8x8xf32>
    %cst_20 = arith.constant dense<0.000000e+00> : vector<1x8xf32>
    %39 = vector.multi_reduction <add>, %38, %cst_20 [2] : vector<1x8x8xf32> to vector<1x8xf32>
    %40 = vector.shape_cast %39 : vector<1x8xf32> to vector<1x8x1xf32>
    %41 = tpu.reciprocal %40 {approx = true} : vector<1x8x1xf32> -> vector<1x8x1xf32>
    %42 = vector.broadcast %41 : vector<1x8x1xf32> to vector<1x8x8xf32>
    %43 = arith.mulf %38, %42 : vector<1x8x8xf32>
    %44 = arith.truncf %43 : vector<1x8x8xf32> to vector<1x8x8xbf16>
    "tpu.trace_start"() <{level = 10 : i32, message = "bqk,bkd->bqd"}> : () -> ()
    %cst_21 = arith.constant dense<0.000000e+00> : vector<1x8x8xf32>
    %45 = tpu.matmul %44, %32, %cst_21 {dimension_numbers = #tpu.dot_dimension_numbers<[2], [1], [1], [2], [0, 0, 0, 1, 1, 2], [0], [0]>} : vector<1x8x8xbf16>, vector<1x8x8xbf16>, vector<1x8x8xf32> -> vector<1x8x8xf32>
    "tpu.trace_stop"() : () -> ()
    %46 = vector.shape_cast %45 : vector<1x8x8xf32> to vector<8x8xf32>
    %47 = arith.truncf %46 : vector<8x8xf32> to vector<8x8xbf16>
    %c0_22 = arith.constant 0 : index
    %c0_23 = arith.constant 0 : index
    %48 = vector.load %arg8[%c0_22, %c0_23] : memref<32x32xbf16, #tpu.memory_space<vmem>>, vector<8x32xbf16>
    %cst_24 = arith.constant dense<0.000000e+00> : vector<8x32xf32>
    %49 = tpu.matmul %47, %48, %cst_24 {dimension_numbers = #tpu.dot_dimension_numbers<[1], [0], [0], [1], [0, 0, 1, 1], [], []>} : vector<8x8xbf16>, vector<8x32xbf16>, vector<8x32xf32> -> vector<8x32xf32>
    %50 = arith.addf %26, %49 : vector<8x32xf32>
    %51 = vector.extract_strided_slice %21 {offsets = [0, 0, 8], sizes = [1, 8, 8], strides = [1, 1, 1]} : vector<1x8x32xf32> to vector<1x8x8xf32>
    %52 = arith.truncf %51 : vector<1x8x8xf32> to vector<1x8x8xbf16>
    %53 = vector.extract_strided_slice %22 {offsets = [0, 0, 8], sizes = [1, 8, 8], strides = [1, 1, 1]} : vector<1x8x32xf32> to vector<1x8x8xf32>
    %54 = arith.truncf %53 : vector<1x8x8xf32> to vector<1x8x8xbf16>
    %55 = vector.extract_strided_slice %23 {offsets = [0, 0, 8], sizes = [1, 8, 8], strides = [1, 1, 1]} : vector<1x8x32xf32> to vector<1x8x8xf32>
    %56 = arith.truncf %55 : vector<1x8x8xf32> to vector<1x8x8xbf16>
    "tpu.trace_start"() <{level = 10 : i32, message = "bqd,bkd->bqk"}> : () -> ()
    %cst_25 = arith.constant dense<0.000000e+00> : vector<1x8x8xf32>
    %57 = tpu.matmul %52, %54, %cst_25 {dimension_numbers = #tpu.dot_dimension_numbers<[2], [2], [1], [1], [0, 0, 0, 1, 1, 1], [0], [0]>} : vector<1x8x8xbf16>, vector<1x8x8xbf16>, vector<1x8x8xf32> -> vector<1x8x8xf32>
    "tpu.trace_stop"() : () -> ()
    %cst_26 = arith.constant dense<0xFF800000> : vector<1x8xf32>
    %58 = vector.multi_reduction <maximumf>, %57, %cst_26 [2] : vector<1x8x8xf32> to vector<1x8xf32>
    %59 = vector.shape_cast %58 : vector<1x8xf32> to vector<1x8x1xf32>
    %60 = vector.broadcast %59 : vector<1x8x1xf32> to vector<1x8x8xf32>
    %61 = arith.subf %57, %60 : vector<1x8x8xf32>
    %62 = math.exp %61 : vector<1x8x8xf32>
    %cst_27 = arith.constant dense<0.000000e+00> : vector<1x8xf32>
    %63 = vector.multi_reduction <add>, %62, %cst_27 [2] : vector<1x8x8xf32> to vector<1x8xf32>
    %64 = vector.shape_cast %63 : vector<1x8xf32> to vector<1x8x1xf32>
    %65 = tpu.reciprocal %64 {approx = true} : vector<1x8x1xf32> -> vector<1x8x1xf32>
    %66 = vector.broadcast %65 : vector<1x8x1xf32> to vector<1x8x8xf32>
    %67 = arith.mulf %62, %66 : vector<1x8x8xf32>
    %68 = arith.truncf %67 : vector<1x8x8xf32> to vector<1x8x8xbf16>
    "tpu.trace_start"() <{level = 10 : i32, message = "bqk,bkd->bqd"}> : () -> ()
    %cst_28 = arith.constant dense<0.000000e+00> : vector<1x8x8xf32>
    %69 = tpu.matmul %68, %56, %cst_28 {dimension_numbers = #tpu.dot_dimension_numbers<[2], [1], [1], [2], [0, 0, 0, 1, 1, 2], [0], [0]>} : vector<1x8x8xbf16>, vector<1x8x8xbf16>, vector<1x8x8xf32> -> vector<1x8x8xf32>
    "tpu.trace_stop"() : () -> ()
    %70 = vector.shape_cast %69 : vector<1x8x8xf32> to vector<8x8xf32>
    %71 = arith.truncf %70 : vector<8x8xf32> to vector<8x8xbf16>
    %c8 = arith.constant 8 : index
    %c0_29 = arith.constant 0 : index
    %72 = vector.load %arg8[%c8, %c0_29] : memref<32x32xbf16, #tpu.memory_space<vmem>>, vector<8x32xbf16>
    %cst_30 = arith.constant dense<0.000000e+00> : vector<8x32xf32>
    %73 = tpu.matmul %71, %72, %cst_30 {dimension_numbers = #tpu.dot_dimension_numbers<[1], [0], [0], [1], [0, 0, 1, 1], [], []>} : vector<8x8xbf16>, vector<8x32xbf16>, vector<8x32xf32> -> vector<8x32xf32>
    %74 = arith.addf %50, %73 : vector<8x32xf32>
    %75 = vector.extract_strided_slice %21 {offsets = [0, 0, 16], sizes = [1, 8, 8], strides = [1, 1, 1]} : vector<1x8x32xf32> to vector<1x8x8xf32>
    %76 = arith.truncf %75 : vector<1x8x8xf32> to vector<1x8x8xbf16>
    %77 = vector.extract_strided_slice %22 {offsets = [0, 0, 16], sizes = [1, 8, 8], strides = [1, 1, 1]} : vector<1x8x32xf32> to vector<1x8x8xf32>
    %78 = arith.truncf %77 : vector<1x8x8xf32> to vector<1x8x8xbf16>
    %79 = vector.extract_strided_slice %23 {offsets = [0, 0, 16], sizes = [1, 8, 8], strides = [1, 1, 1]} : vector<1x8x32xf32> to vector<1x8x8xf32>
    %80 = arith.truncf %79 : vector<1x8x8xf32> to vector<1x8x8xbf16>
    "tpu.trace_start"() <{level = 10 : i32, message = "bqd,bkd->bqk"}> : () -> ()
    %cst_31 = arith.constant dense<0.000000e+00> : vector<1x8x8xf32>
    %81 = tpu.matmul %76, %78, %cst_31 {dimension_numbers = #tpu.dot_dimension_numbers<[2], [2], [1], [1], [0, 0, 0, 1, 1, 1], [0], [0]>} : vector<1x8x8xbf16>, vector<1x8x8xbf16>, vector<1x8x8xf32> -> vector<1x8x8xf32>
    "tpu.trace_stop"() : () -> ()
    %cst_32 = arith.constant dense<0xFF800000> : vector<1x8xf32>
    %82 = vector.multi_reduction <maximumf>, %81, %cst_32 [2] : vector<1x8x8xf32> to vector<1x8xf32>
    %83 = vector.shape_cast %82 : vector<1x8xf32> to vector<1x8x1xf32>
    %84 = vector.broadcast %83 : vector<1x8x1xf32> to vector<1x8x8xf32>
    %85 = arith.subf %81, %84 : vector<1x8x8xf32>
    %86 = math.exp %85 : vector<1x8x8xf32>
    %cst_33 = arith.constant dense<0.000000e+00> : vector<1x8xf32>
    %87 = vector.multi_reduction <add>, %86, %cst_33 [2] : vector<1x8x8xf32> to vector<1x8xf32>
    %88 = vector.shape_cast %87 : vector<1x8xf32> to vector<1x8x1xf32>
    %89 = tpu.reciprocal %88 {approx = true} : vector<1x8x1xf32> -> vector<1x8x1xf32>
    %90 = vector.broadcast %89 : vector<1x8x1xf32> to vector<1x8x8xf32>
    %91 = arith.mulf %86, %90 : vector<1x8x8xf32>
    %92 = arith.truncf %91 : vector<1x8x8xf32> to vector<1x8x8xbf16>
    "tpu.trace_start"() <{level = 10 : i32, message = "bqk,bkd->bqd"}> : () -> ()
    %cst_34 = arith.constant dense<0.000000e+00> : vector<1x8x8xf32>
    %93 = tpu.matmul %92, %80, %cst_34 {dimension_numbers = #tpu.dot_dimension_numbers<[2], [1], [1], [2], [0, 0, 0, 1, 1, 2], [0], [0]>} : vector<1x8x8xbf16>, vector<1x8x8xbf16>, vector<1x8x8xf32> -> vector<1x8x8xf32>
    "tpu.trace_stop"() : () -> ()
    %94 = vector.shape_cast %93 : vector<1x8x8xf32> to vector<8x8xf32>
    %95 = arith.truncf %94 : vector<8x8xf32> to vector<8x8xbf16>
    %c16 = arith.constant 16 : index
    %c0_35 = arith.constant 0 : index
    %96 = vector.load %arg8[%c16, %c0_35] : memref<32x32xbf16, #tpu.memory_space<vmem>>, vector<8x32xbf16>
    %cst_36 = arith.constant dense<0.000000e+00> : vector<8x32xf32>
    %97 = tpu.matmul %95, %96, %cst_36 {dimension_numbers = #tpu.dot_dimension_numbers<[1], [0], [0], [1], [0, 0, 1, 1], [], []>} : vector<8x8xbf16>, vector<8x32xbf16>, vector<8x32xf32> -> vector<8x32xf32>
    %98 = arith.addf %74, %97 : vector<8x32xf32>
    %99 = vector.extract_strided_slice %21 {offsets = [0, 0, 24], sizes = [1, 8, 8], strides = [1, 1, 1]} : vector<1x8x32xf32> to vector<1x8x8xf32>
    %100 = arith.truncf %99 : vector<1x8x8xf32> to vector<1x8x8xbf16>
    %101 = vector.extract_strided_slice %22 {offsets = [0, 0, 24], sizes = [1, 8, 8], strides = [1, 1, 1]} : vector<1x8x32xf32> to vector<1x8x8xf32>
    %102 = arith.truncf %101 : vector<1x8x8xf32> to vector<1x8x8xbf16>
    %103 = vector.extract_strided_slice %23 {offsets = [0, 0, 24], sizes = [1, 8, 8], strides = [1, 1, 1]} : vector<1x8x32xf32> to vector<1x8x8xf32>
    %104 = arith.truncf %103 : vector<1x8x8xf32> to vector<1x8x8xbf16>
    "tpu.trace_start"() <{level = 10 : i32, message = "bqd,bkd->bqk"}> : () -> ()
    %cst_37 = arith.constant dense<0.000000e+00> : vector<1x8x8xf32>
    %105 = tpu.matmul %100, %102, %cst_37 {dimension_numbers = #tpu.dot_dimension_numbers<[2], [2], [1], [1], [0, 0, 0, 1, 1, 1], [0], [0]>} : vector<1x8x8xbf16>, vector<1x8x8xbf16>, vector<1x8x8xf32> -> vector<1x8x8xf32>
    "tpu.trace_stop"() : () -> ()
    %cst_38 = arith.constant dense<0xFF800000> : vector<1x8xf32>
    %106 = vector.multi_reduction <maximumf>, %105, %cst_38 [2] : vector<1x8x8xf32> to vector<1x8xf32>
    %107 = vector.shape_cast %106 : vector<1x8xf32> to vector<1x8x1xf32>
    %108 = vector.broadcast %107 : vector<1x8x1xf32> to vector<1x8x8xf32>
    %109 = arith.subf %105, %108 : vector<1x8x8xf32>
    %110 = math.exp %109 : vector<1x8x8xf32>
    %cst_39 = arith.constant dense<0.000000e+00> : vector<1x8xf32>
    %111 = vector.multi_reduction <add>, %110, %cst_39 [2] : vector<1x8x8xf32> to vector<1x8xf32>
    %112 = vector.shape_cast %111 : vector<1x8xf32> to vector<1x8x1xf32>
    %113 = tpu.reciprocal %112 {approx = true} : vector<1x8x1xf32> -> vector<1x8x1xf32>
    %114 = vector.broadcast %113 : vector<1x8x1xf32> to vector<1x8x8xf32>
    %115 = arith.mulf %110, %114 : vector<1x8x8xf32>
    %116 = arith.truncf %115 : vector<1x8x8xf32> to vector<1x8x8xbf16>
    "tpu.trace_start"() <{level = 10 : i32, message = "bqk,bkd->bqd"}> : () -> ()
    %cst_40 = arith.constant dense<0.000000e+00> : vector<1x8x8xf32>
    %117 = tpu.matmul %116, %104, %cst_40 {dimension_numbers = #tpu.dot_dimension_numbers<[2], [1], [1], [2], [0, 0, 0, 1, 1, 2], [0], [0]>} : vector<1x8x8xbf16>, vector<1x8x8xbf16>, vector<1x8x8xf32> -> vector<1x8x8xf32>
    "tpu.trace_stop"() : () -> ()
    %118 = vector.shape_cast %117 : vector<1x8x8xf32> to vector<8x8xf32>
    %119 = arith.truncf %118 : vector<8x8xf32> to vector<8x8xbf16>
    %c24 = arith.constant 24 : index
    %c0_41 = arith.constant 0 : index
    %120 = vector.load %arg8[%c24, %c0_41] : memref<32x32xbf16, #tpu.memory_space<vmem>>, vector<8x32xbf16>
    %cst_42 = arith.constant dense<0.000000e+00> : vector<8x32xf32>
    %121 = tpu.matmul %119, %120, %cst_42 {dimension_numbers = #tpu.dot_dimension_numbers<[1], [0], [0], [1], [0, 0, 1, 1], [], []>} : vector<8x8xbf16>, vector<8x32xbf16>, vector<8x32xf32> -> vector<8x32xf32>
    %122 = arith.addf %98, %121 : vector<8x32xf32>
    %123 = arith.addf %0, %122 : vector<8x32xf32>
    %cst_43 = arith.constant dense<0.000000e+00> : vector<8xf32>
    %124 = vector.multi_reduction <add>, %123, %cst_43 [1] : vector<8x32xf32> to vector<8xf32>
    %125 = vector.shape_cast %124 : vector<8xf32> to vector<8x1xf32>
    %cst_44 = arith.constant 3.200000e+01 : f32
    %126 = vector.broadcast %cst_44 : f32 to vector<8x1xf32>
    %127 = arith.divf %125, %126 : vector<8x1xf32>
    %128 = vector.broadcast %127 : vector<8x1xf32> to vector<8x32xf32>
    %129 = arith.subf %123, %128 : vector<8x32xf32>
    %130 = arith.mulf %129, %129 : vector<8x32xf32>
    %cst_45 = arith.constant dense<0.000000e+00> : vector<8xf32>
    %131 = vector.multi_reduction <add>, %130, %cst_45 [1] : vector<8x32xf32> to vector<8xf32>
    %132 = vector.shape_cast %131 : vector<8xf32> to vector<8x1xf32>
    %cst_46 = arith.constant 3.200000e+01 : f32
    %133 = vector.broadcast %cst_46 : f32 to vector<8x1xf32>
    %134 = arith.divf %132, %133 : vector<8x1xf32>
    %135 = vector.broadcast %127 : vector<8x1xf32> to vector<8x32xf32>
    %136 = arith.subf %123, %135 : vector<8x32xf32>
    %cst_47 = arith.constant 9.99999974E-6 : f32
    %137 = vector.broadcast %cst_47 : f32 to vector<8x1xf32>
    %138 = arith.addf %134, %137 : vector<8x1xf32>
    %139 = math.rsqrt %138 : vector<8x1xf32>
    %140 = vector.broadcast %139 : vector<8x1xf32> to vector<8x32xf32>
    %141 = arith.mulf %136, %140 : vector<8x32xf32>
    %c0_48 = arith.constant 0 : index
    %c0_49 = arith.constant 0 : index
    %142 = vector.load %arg14[%c0_48, %c0_49] : memref<1x32xf32, #tpu.memory_space<vmem>>, vector<1x32xf32>
    %143 = vector.broadcast %142 : vector<1x32xf32> to vector<8x32xf32>
    %144 = arith.mulf %141, %143 : vector<8x32xf32>
    %c0_50 = arith.constant 0 : index
    %c0_51 = arith.constant 0 : index
    %145 = vector.load %arg15[%c0_50, %c0_51] : memref<1x32xf32, #tpu.memory_space<vmem>>, vector<1x32xf32>
    %146 = vector.broadcast %145 : vector<1x32xf32> to vector<8x32xf32>
    %147 = arith.addf %144, %146 : vector<8x32xf32>
    %c0_52 = arith.constant 0 : index
    %c0_53 = arith.constant 0 : index
    %148 = vector.load %arg10[%c0_52, %c0_53] : memref<32x64xbf16, #tpu.memory_space<vmem>>, vector<32x64xbf16>
    %149 = arith.truncf %147 : vector<8x32xf32> to vector<8x32xbf16>
    %cst_54 = arith.constant dense<0.000000e+00> : vector<8x64xf32>
    %150 = tpu.matmul %149, %148, %cst_54 {dimension_numbers = #tpu.dot_dimension_numbers<[1], [0], [0], [1], [0, 0, 1, 1], [], []>} : vector<8x32xbf16>, vector<32x64xbf16>, vector<8x64xf32> -> vector<8x64xf32>
    %c0_55 = arith.constant 0 : index
    %c0_56 = arith.constant 0 : index
    %151 = vector.load %arg11[%c0_55, %c0_56] : memref<1x64xf32, #tpu.memory_space<vmem>>, vector<1x64xf32>
    %152 = vector.broadcast %151 : vector<1x64xf32> to vector<8x64xf32>
    %153 = arith.addf %150, %152 : vector<8x64xf32>
    %cst_57 = arith.constant 0.000000e+00 : f32
    %154 = vector.broadcast %cst_57 : f32 to vector<8x64xf32>
    %155 = arith.maximumf %153, %154 : vector<8x64xf32>
    %c0_58 = arith.constant 0 : index
    %c0_59 = arith.constant 0 : index
    %156 = vector.load %arg12[%c0_58, %c0_59] : memref<64x32xbf16, #tpu.memory_space<vmem>>, vector<64x32xbf16>
    %157 = arith.truncf %155 : vector<8x64xf32> to vector<8x64xbf16>
    %cst_60 = arith.constant dense<0.000000e+00> : vector<8x32xf32>
    %158 = tpu.matmul %157, %156, %cst_60 {dimension_numbers = #tpu.dot_dimension_numbers<[1], [0], [0], [1], [0, 0, 1, 1], [], []>} : vector<8x64xbf16>, vector<64x32xbf16>, vector<8x32xf32> -> vector<8x32xf32>
    %c0_61 = arith.constant 0 : index
    %c0_62 = arith.constant 0 : index
    %159 = vector.load %arg13[%c0_61, %c0_62] : memref<1x32xf32, #tpu.memory_space<vmem>>, vector<1x32xf32>
    %160 = vector.broadcast %159 : vector<1x32xf32> to vector<8x32xf32>
    %161 = arith.addf %158, %160 : vector<8x32xf32>
    %162 = arith.addf %147, %161 : vector<8x32xf32>
    %cst_63 = arith.constant dense<0.000000e+00> : vector<8xf32>
    %163 = vector.multi_reduction <add>, %162, %cst_63 [1] : vector<8x32xf32> to vector<8xf32>
    %164 = vector.shape_cast %163 : vector<8xf32> to vector<8x1xf32>
    %cst_64 = arith.constant 3.200000e+01 : f32
    %165 = vector.broadcast %cst_64 : f32 to vector<8x1xf32>
    %166 = arith.divf %164, %165 : vector<8x1xf32>
    %167 = vector.broadcast %166 : vector<8x1xf32> to vector<8x32xf32>
    %168 = arith.subf %162, %167 : vector<8x32xf32>
    %169 = arith.mulf %168, %168 : vector<8x32xf32>
    %cst_65 = arith.constant dense<0.000000e+00> : vector<8xf32>
    %170 = vector.multi_reduction <add>, %169, %cst_65 [1] : vector<8x32xf32> to vector<8xf32>
    %171 = vector.shape_cast %170 : vector<8xf32> to vector<8x1xf32>
    %cst_66 = arith.constant 3.200000e+01 : f32
    %172 = vector.broadcast %cst_66 : f32 to vector<8x1xf32>
    %173 = arith.divf %171, %172 : vector<8x1xf32>
    %174 = vector.broadcast %166 : vector<8x1xf32> to vector<8x32xf32>
    %175 = arith.subf %162, %174 : vector<8x32xf32>
    %cst_67 = arith.constant 9.99999974E-6 : f32
    %176 = vector.broadcast %cst_67 : f32 to vector<8x1xf32>
    %177 = arith.addf %173, %176 : vector<8x1xf32>
    %178 = math.rsqrt %177 : vector<8x1xf32>
    %179 = vector.broadcast %178 : vector<8x1xf32> to vector<8x32xf32>
    %180 = arith.mulf %175, %179 : vector<8x32xf32>
    %c0_68 = arith.constant 0 : index
    %c0_69 = arith.constant 0 : index
    %181 = vector.load %arg16[%c0_68, %c0_69] : memref<1x32xf32, #tpu.memory_space<vmem>>, vector<1x32xf32>
    %182 = vector.broadcast %181 : vector<1x32xf32> to vector<8x32xf32>
    %183 = arith.mulf %180, %182 : vector<8x32xf32>
    %c0_70 = arith.constant 0 : index
    %c0_71 = arith.constant 0 : index
    %184 = vector.load %arg17[%c0_70, %c0_71] : memref<1x32xf32, #tpu.memory_space<vmem>>, vector<1x32xf32>
    %185 = vector.broadcast %184 : vector<1x32xf32> to vector<8x32xf32>
    %186 = arith.addf %183, %185 : vector<8x32xf32>
    %c0_72 = arith.constant 0 : index
    %c0_73 = arith.constant 0 : index
    %187 = vector.load %arg18[%c0_72, %c0_73] : memref<8x32xf32, #tpu.memory_space<vmem>>, vector<8x32xf32>
    tpu.vector_store %arg18[%c0_72, %c0_73], %186 {strides = array<i32>} : memref<8x32xf32, #tpu.memory_space<vmem>>, vector<8x32xf32>,
    return
  }
  func.func @transform_0(%arg0: i32) -> (i32, i32) {
    %c0_i32 = arith.constant 0 : i32
    %c0_i32_0 = arith.constant 0 : i32
    return %arg0, %c0_i32 : i32, i32
  }
  func.func @transform_1(%arg0: i32) -> (i32, i32) {
    %c0_i32 = arith.constant 0 : i32
    %c0_i32_0 = arith.constant 0 : i32
    %c0_i32_1 = arith.constant 0 : i32
    return %c0_i32, %c0_i32_0 : i32, i32
  }
  func.func @transform_2(%arg0: i32) -> (i32, i32) {
    %c0_i32 = arith.constant 0 : i32
    %c0_i32_0 = arith.constant 0 : i32
    %c0_i32_1 = arith.constant 0 : i32
    return %c0_i32, %c0_i32_0 : i32, i32
  }
  func.func @transform_3(%arg0: i32) -> (i32, i32) {
    %c0_i32 = arith.constant 0 : i32
    %c0_i32_0 = arith.constant 0 : i32
    %c0_i32_1 = arith.constant 0 : i32
    return %c0_i32, %c0_i32_0 : i32, i32
  }
  func.func @transform_4(%arg0: i32) -> (i32, i32) {
    %c0_i32 = arith.constant 0 : i32
    %c0_i32_0 = arith.constant 0 : i32
    %c0_i32_1 = arith.constant 0 : i32
    return %c0_i32, %c0_i32_0 : i32, i32
  }
  func.func @transform_5(%arg0: i32) -> (i32, i32) {
    %c0_i32 = arith.constant 0 : i32
    %c0_i32_0 = arith.constant 0 : i32
    %c0_i32_1 = arith.constant 0 : i32
    return %c0_i32, %c0_i32_0 : i32, i32
  }
  func.func @transform_6(%arg0: i32) -> (i32, i32) {
    %c0_i32 = arith.constant 0 : i32
    %c0_i32_0 = arith.constant 0 : i32
    %c0_i32_1 = arith.constant 0 : i32
    return %c0_i32, %c0_i32_0 : i32, i32
  }
  func.func @transform_7(%arg0: i32) -> (i32, i32) {
    %c0_i32 = arith.constant 0 : i32
    %c0_i32_0 = arith.constant 0 : i32
    %c0_i32_1 = arith.constant 0 : i32
    return %c0_i32, %c0_i32_0 : i32, i32
  }
  func.func @transform_8(%arg0: i32) -> (i32, i32) {
    %c0_i32 = arith.constant 0 : i32
    %c0_i32_0 = arith.constant 0 : i32
    %c0_i32_1 = arith.constant 0 : i32
    return %c0_i32, %c0_i32_0 : i32, i32
  }
  func.func @transform_9(%arg0: i32) -> (i32, i32) {
    %c0_i32 = arith.constant 0 : i32
    %c0_i32_0 = arith.constant 0 : i32
    %c0_i32_1 = arith.constant 0 : i32
    return %c0_i32, %c0_i32_0 : i32, i32
  }
  func.func @transform_10(%arg0: i32) -> (i32, i32) {
    %c0_i32 = arith.constant 0 : i32
    %c0_i32_0 = arith.constant 0 : i32
    %c0_i32_1 = arith.constant 0 : i32
    return %c0_i32, %c0_i32_0 : i32, i32
  }
  func.func @transform_11(%arg0: i32) -> (i32, i32) {
    %c0_i32 = arith.constant 0 : i32
    %c0_i32_0 = arith.constant 0 : i32
    %c0_i32_1 = arith.constant 0 : i32
    return %c0_i32, %c0_i32_0 : i32, i32
  }
  func.func @transform_12(%arg0: i32) -> (i32, i32) {
    %c0_i32 = arith.constant 0 : i32
    %c0_i32_0 = arith.constant 0 : i32
    %c0_i32_1 = arith.constant 0 : i32
    return %c0_i32, %c0_i32_0 : i32, i32
  }
  func.func @transform_13(%arg0: i32) -> (i32, i32) {
    %c0_i32 = arith.constant 0 : i32
    %c0_i32_0 = arith.constant 0 : i32
    %c0_i32_1 = arith.constant 0 : i32
    return %c0_i32, %c0_i32_0 : i32, i32
  }
  func.func @transform_14(%arg0: i32) -> (i32, i32) {
    %c0_i32 = arith.constant 0 : i32
    %c0_i32_0 = arith.constant 0 : i32
    %c0_i32_1 = arith.constant 0 : i32
    return %c0_i32, %c0_i32_0 : i32, i32
  }
  func.func @transform_15(%arg0: i32) -> (i32, i32) {
    %c0_i32 = arith.constant 0 : i32
    %c0_i32_0 = arith.constant 0 : i32
    %c0_i32_1 = arith.constant 0 : i32
    return %c0_i32, %c0_i32_0 : i32, i32
  }
  func.func @transform_16(%arg0: i32) -> (i32, i32) {
    %c0_i32 = arith.constant 0 : i32
    %c0_i32_0 = arith.constant 0 : i32
    %c0_i32_1 = arith.constant 0 : i32
    return %c0_i32, %c0_i32_0 : i32, i32
  }
  func.func @transform_17(%arg0: i32) -> (i32, i32) {
    %c0_i32 = arith.constant 0 : i32
    %c0_i32_0 = arith.constant 0 : i32
    return %arg0, %c0_i32 : i32, i32
  }
}

</mosaic_0001>

<bundles_post_ra>
// kernel: tpu_custom_call.1
= control target key start
LH: loop header
LB: loop body
LE: loop exit
PB: predicated region body
PF: predicated region fallthrough
CT: control target
= control target key end

     0   :  { %s2789_s0 = inlined_call_operand.vmem [shape: f32[16,32], index: 0, kind: input, shape index: {}]   ;;  %s2790_s1 = inlined_call_operand.vmem [shape: bf16[32,32], index: 1, kind: input, shape index: {}]   ;;  %s2791_s2 = inlined_call_operand.vmem [shape: f32[1,32], index: 2, kind: input, shape index: {}]   ;;  %s2792_s3 = inlined_call_operand.vmem [shape: bf16[32,32], index: 3, kind: input, shape index: {}]   ;;  %s2793_s4 = inlined_call_operand.vmem [shape: f32[1,32], index: 4, kind: input, shape index: {}]   ;;  %s2794_s5 = inlined_call_operand.hbm [shape: bf16[32,32], index: 5, kind: input, shape index: {}]   ;;  %s2795_s6 = inlined_call_operand.hbm [shape: f32[1,32], index: 6, kind: input, shape index: {}]   ;;  %s2796_s7 = inlined_call_operand.hbm [shape: bf16[32,32], index: 7, kind: input, shape index: {}]   ;;  %s2797_s8 = inlined_call_operand.hbm [shape: f32[1,32], index: 8, kind: input, shape index: {}]   ;;  %s2798_s9 = inlined_call_operand.vmem [shape: bf16[32,64], index: 9, kind: input, shape index: {}]   ;;  %s2799_s10 = inlined_call_operand.vmem [shape: f32[1,64], index: 10, kind: input, shape index: {}]   ;;  %s2800_s11 = inlined_call_operand.vmem [shape: bf16[64,32], index: 11, kind: input, shape index: {}]   ;;  %s2801_s12 = inlined_call_operand.vmem [shape: f32[1,32], index: 12, kind: input, shape index: {}]   ;;  %s2802_s13 = inlined_call_operand.vmem [shape: f32[1,32], index: 13, kind: input, shape index: {}]   ;;  %s2803_s14 = inlined_call_operand.vmem [shape: f32[1,32], index: 14, kind: input, shape index: {}]   ;;  %s2804_s15 = inlined_call_operand.vmem [shape: f32[1,32], index: 15, kind: input, shape index: {}]   ;;  %s2805_s16 = inlined_call_operand.vmem [shape: f32[1,32], index: 16, kind: input, shape index: {}]   ;;  %s2806_s17 = inlined_call_operand.hbm [shape: f32[16,32], index: 17, kind: output, shape index: {}]  }
   0x1   :  { %2818 = sst [smem:[#allocation21_spill]] %s2789_s0 }
   0x2   :  { %2819 = sst [smem:[#allocation22_spill]] %s2790_s1 }
   0x3   :  { %2820 = sst [smem:[#allocation23_spill]] %s2794_s5 }
   0x4   :  { %2821 = sst [smem:[#allocation24_spill]] %s2795_s6 }
   0x5   :  { %2822 = sst [smem:[#allocation25_spill]] %s2804_s15 }
   0x6   :  { %2823 = sst [smem:[#allocation26_spill]] %s2805_s16 }
   0x7   :  { %2824 = sst [smem:[#allocation27_spill]] %s2806_s17 }
   0x8   :  { %22 = vsyncpa [#allocation3], 0 }
   0x9   :  { %23 = vsyncpa [#allocation6], 0 }
   0xa   :  { %24 = vsyncpa [#allocation9], 0 }
   0xb   :  { %25 = vsyncpa [#allocation4], 0 }
   0xc   :  { %27 = vsyncpa [#allocation4 + $0x1], 0  ;;  %s2392_s24 = smov 0   ;;  %s2394_s25 = smov 0  }
   0xd   :  { %s2396_s26 = smov 0   ;;  %s2398_s27 = smov 0  }
   0xe LB: > { %2825 = sst [smem:[#allocation15_spill]] %s2276_s24  ;;  %s2413_s28 = sadd.s32 4294967295, %s2288_s27   ;;  %s2288_s27 = sphi %s2398_s27, %s2855_s27   ;;  %s2284_s26 = sphi %s2396_s26, %s2857_s26   ;;  %s2280_s25 = sphi %s2394_s25, %s2859_s25   ;;  %s2276_s24 = sphi %s2392_s24, %s2858_s24  }
   0xf   : > { %2826 = sst [smem:[#allocation16_spill]] %s2284_s26  ;;  %s1769_s29 = sadd.s32 4294967294, %s2288_s27  }
  0x10   : > { %2827 = sst [smem:[#allocation17_spill]] %s2288_s27  ;;  %s2417_s0 = sadd.s32 1, %s2288_s27  }
  0x11   : > { %2828 = sst [smem:[#allocation18_spill]] %s2417_s0  ;;  %s402_s30 = sadd.s32 1, %s2284_s26 }
  0x12   : > { %s399_s18 = ssub.s32 %s2288_s27, %s2417_s0  ;;  %p412_p0 = scmp.ne.s32.totalorder %s2284_s26, %s2280_s25 }
  0x13   : > { %p400_p1 = scmp.eq.s32.totalorder %s399_s18, 0  ;;  %p413_p2 = scmp.eq.s32.totalorder %s2413_s28, 1 }
  0x14   : > { %p418_p3 = scmp.ne.s32.totalorder %s2280_s25, %s2276_s24  ;;  %p419_p4 = scmp.eq.s32.totalorder %s1769_s29, 1 }
  0x15   : > { %s2428_s19 = scalar_select %p400_p1, %s2284_s26, %s402_s30  }
  0x16   : > { %p2430_p5 = por %p413_p2, %p412_p0  ;;  %p2434_p6 = por %p419_p4, %p418_p3 }
  0x17   : > { %2829 = sst [smem:[#allocation19_spill]] %s2428_s19  ;;  %p1770_p7 = scmp.ge.s32.totalorder %s2288_s27, 1 }
  0x18   : > { %s2830_s1 = scalar_select %p2430_p5, 1, 0 }
  0x19   : > { %s2831_s20 = scalar_select %p2434_p6, 1, 0 }
  0x1a   : > { %p426_p8 = scmp.lt.s32.totalorder %s2288_s27, 3  ;;  %p2815_p9 = scmp.eq.s32.totalorder %s2413_s28, 0 }
  0x1b   : > { %2832 = sst [smem:[#allocation20_spill]] %s2831_s20  ;;  %s2290_s22 = smov [#allocation5]  }
  0x1c   : > { %p2441_p10 = pnand %p1770_p7, %p426_p8  ;;  %s464_s23 = sshll.u32 %s2290_s22, 4  ;;  %s465_s23 = int_to_ptr.vmem [resolvable:$true] %s464_s23 }
  0x1d   : > { %s2291_s29 = smov [#allocation2]   ;;  %s2292_s19 = smov [#allocation7]  }
  0x1e   : > { %s2833_s21 = scalar_select %p2441_p10, 1, 0 }
  0x1f   : > { %p2001_p11 = pneg %p2441_p10  ;;  %s450_s30 = sshll.u32 %s2291_s29, 4  ;;  %s2453_s30 = int_to_ptr.vmem [resolvable:$true] %s450_s30 }
  0x20   : > { %s2455_s26 = sshll.u32 %s2292_s19, 4  ;;  %s2835_s6 = sld [smem:[#allocation24_spill]]  ;;  %s475_s26 = int_to_ptr.vmem [resolvable:$true] %s2455_s26 }
  0x21   : > { %p2449_p12 = pnand %p2815_p9, %p2001_p11 }
  0x23   : > { %p2465_p0 = pneg %p2449_p12 }
  0x26   : > { %s2102_s22 = scalar_lea.hbm %s2835_s6, 16 }
  0x27   : > { %p2103_p13 = scmp.ne.s32.totalorder %s2835_s6, %s2102_s22  ;;  %p2109_p3 = scmp.lt.u32.totalorder %s2102_s22, %s2835_s6 }
  0x29   : > { %p2105_p1 = pnand %p2465_p0, %p2103_p13 }
  0x2b   : > { %p2106_p2 = pneg %p2105_p1 }
  0x2d   : > { %p2111_p4 = pnand %p2109_p3, %p2106_p2 }
  0x2f   : > { %2114 = shalt.err (!%p2111_p4)
}
  0x30   : > { %s2115_s0 = scalar_lea.vmem %s465_s23, 16  ;;  %s2122_s24 = scalar_lea.vmem %s465_s23, 32 }
  0x31   : > { %p2116_p7 = scmp.ne.s32.totalorder %s465_s23, %s2115_s0  ;;  %p2123_p9 = scmp.lt.s32.totalorder %s465_s23, %s465_s23 }
  0x32   : > { %p2124_p6 = scmp.lt.s32.totalorder %s2122_s24, %s2115_s0 }
  0x33   : > { %p2118_p8 = pnand %p2116_p7, %p2465_p0 }
  0x34   : > { %p2125_p5 = por %p2124_p6, %p2123_p9 }
  0x35   : > { %p2119_p11 = pneg %p2118_p8 }
  0x37   : > { %p2126_p10 = pnand %p2125_p5, %p2119_p11 }
  0x39   : > { %2129 = shalt.err (!%p2126_p10)
}
  0x3a   : > { %2007 = dma.hbm_to_vmem [thread:$0]  (!%p2449_p12), %s2835_s6, 16, %s465_s23, [#allocation6]  }
  0x3b   : > { %s2837_s5 = sld [smem:[#allocation23_spill]] }
  0x41   : > { %s2130_s19 = scalar_lea.hbm %s2837_s5, 256 }
  0x42   : > { %p2131_p13 = scmp.ne.s32.totalorder %s2837_s5, %s2130_s19  ;;  %p2137_p5 = scmp.lt.u32.totalorder %s2130_s19, %s2837_s5 }
  0x44   : > { %p2133_p1 = pnand %p2131_p13, %p2465_p0 }
  0x46   : > { %p2134_p6 = pneg %p2133_p1 }
  0x48   : > { %p2139_p9 = pnand %p2137_p5, %p2134_p6 }
  0x4a   : > { %2142 = shalt.err (!%p2139_p9)
}
  0x4b   : > { %s2143_s23 = scalar_lea.vmem %s2453_s30, 256  ;;  %p2151_p4 = scmp.lt.s32.totalorder %s2453_s30, %s2453_s30 }
  0x4c   : > { %p2144_p10 = scmp.ne.s32.totalorder %s2453_s30, %s2143_s23  ;;  %p2152_p7 = scmp.lt.s32.totalorder %s2143_s23, %s2143_s23 }
  0x4e   : > { %p2146_p2 = pnand %p2144_p10, %p2465_p0  ;;  %p2153_p8 = por %p2152_p7, %p2151_p4 }
  0x50   : > { %p2147_p3 = pneg %p2146_p2 }
  0x52   : > { %p2154_p11 = pnand %p2153_p8, %p2147_p3 }
  0x54   : > { %2157 = shalt.err (!%p2154_p11)
}
  0x55   : > { %s2293_s15 = smov 64   ;;  %s2294_s16 = smov 4  }
  0x56   : > { %2004 = dma.hbm_to_vmem [thread:$0]  (!%p2449_p12), %s2837_s5, 256, %s2453_s30, [#allocation3], %s2293_s15, %s2293_s15, %s2294_s16  }
  0x57   : > { %s2158_s19 = scalar_lea.hbm %s2796_s7, 256 }
  0x58   : > { %p2159_p13 = scmp.ne.s32.totalorder %s2796_s7, %s2158_s19  ;;  %p2165_p5 = scmp.lt.u32.totalorder %s2158_s19, %s2796_s7 }
  0x5a   : > { %p2161_p1 = pnand %p2159_p13, %p2465_p0 }
  0x5c   : > { %p2162_p6 = pneg %p2161_p1 }
  0x5e   : > { %p2167_p9 = pnand %p2165_p5, %p2162_p6 }
  0x60   : > { %2170 = shalt.err (!%p2167_p9)
}
  0x61   : > { %s2171_s27 = scalar_lea.vmem %s475_s26, 256  ;;  %p2179_p4 = scmp.lt.s32.totalorder %s475_s26, %s475_s26 }
  0x62   : > { %p2172_p10 = scmp.ne.s32.totalorder %s475_s26, %s2171_s27  ;;  %p2180_p7 = scmp.lt.s32.totalorder %s2171_s27, %s2171_s27 }
  0x64   : > { %p2174_p2 = pnand %p2172_p10, %p2465_p0  ;;  %p2181_p8 = por %p2180_p7, %p2179_p4 }
  0x66   : > { %p2175_p3 = pneg %p2174_p2 }
  0x68   : > { %p2182_p11 = pnand %p2181_p8, %p2175_p3 }
  0x6a   : > { %2185 = shalt.err (!%p2182_p11)
}
  0x6b   : > { %2010 = dma.hbm_to_vmem [thread:$0]  (!%p2449_p12), %s2796_s7, 256, %s475_s26, [#allocation6], %s2293_s15, %s2293_s15, %s2294_s16  }
  0x6c   : > { %s2295_s6 = smov [#allocation8]   ;;  %s2186_s0 = scalar_lea.hbm %s2797_s8, 16 }
  0x6d   : > { %s488_s17 = sshll.u32 %s2295_s6, 4  ;;  %p2187_p13 = scmp.ne.s32.totalorder %s2797_s8, %s2186_s0  ;;  %s489_s17 = int_to_ptr.vmem [resolvable:$true] %s488_s17 }
  0x6e   : > { %p2193_p5 = scmp.lt.u32.totalorder %s2186_s0, %s2797_s8 }
  0x6f   : > { %p2189_p1 = pnand %p2187_p13, %p2465_p0 }
  0x71   : > { %p2190_p6 = pneg %p2189_p1 }
  0x73   : > { %p2195_p9 = pnand %p2193_p5, %p2190_p6 }
  0x75   : > { %2198 = shalt.err (!%p2195_p9)
}
  0x76   : > { %s2199_s26 = scalar_lea.vmem %s489_s17, 16  ;;  %s2206_s15 = scalar_lea.vmem %s489_s17, 32 }
  0x77   : > { %p2200_p10 = scmp.ne.s32.totalorder %s489_s17, %s2199_s26  ;;  %p2207_p4 = scmp.lt.s32.totalorder %s489_s17, %s489_s17 }
  0x78   : > { %p2208_p7 = scmp.lt.s32.totalorder %s2206_s15, %s2199_s26 }
  0x79   : > { %p2202_p2 = pnand %p2200_p10, %p2465_p0 }
  0x7a   : > { %p2209_p8 = por %p2208_p7, %p2207_p4 }
  0x7b   : > { %p2203_p3 = pneg %p2202_p2 }
  0x7d   : > { %p2210_p11 = pnand %p2209_p8, %p2203_p3 }
  0x7f   : > { %2213 = shalt.err (!%p2210_p11)
}
  0x80   : > { %2013 = dma.hbm_to_vmem [thread:$0]  (!%p2449_p12), %s2797_s8, 16, %s489_s17, [#allocation9]  }
  0x81   : > { %p2838_p13 = scmp.ne.s32.totalorder %s2833_s21, 0 }
  0x82   : > { %p2839_p1 = scmp.eq.s32.totalorder (!%p2838_p13), %s2413_s28, 0 }
  0x83   : > { %532 = sbr.rel (%p2838_p13) target bundleno = 4035 (0xfc3), region = 88 }
  0x8a   : > { %2259 = dma.done.wait (%p2839_p1), [#allocation3], 256   ;;  %p2840_p0 = pmov %p2839_p1 }
  0x8c   : > { %2261 = vsyncadd (%p2840_p0), [#allocation3], 4294967040  ;;  %p2841_p6 = pmov %p2840_p0 }
  0x8d   : > { %p2842_p5 = pmov %p2840_p0 }
  0x8e   : > { %2263 = dma.done.wait (%p2841_p6), [#allocation6], 272  }
  0x8f   : > { %2265 = vsyncadd (%p2842_p5), [#allocation6], 4294967024  ;;  %p2843_p9 = pmov %p2840_p0 }
  0x90   : > { %p2844_p12 = pmov %p2840_p0 }
  0x91   : > { %2267 = dma.done.wait (%p2843_p9), [#allocation9], 16  }
  0x92   : > { %2269 = vsyncadd (%p2844_p12), [#allocation9], 4294967280  ;;  %p595_p10 = scmp.lt.s32.totalorder %s2413_s28, 1  ;;  %v2296_v0 = vmov 0.0   ;;  %vm2297_vm0 = vmmov 0   ;;  %s2845_s20 = sld [smem:[#allocation21_spill]] }
  0x93   : > { %1867 = vmatprep.subr.bf16.mxu1 %v2296_v0  ;;  %1871 = vmatprep.mubr.msk.bf16.mxu1 %vm2297_vm0, %v2296_v0  ;;  %s2846_s19 = sld [smem:[#allocation22_spill]]  ;;  %vm625_vm1 = vcmask 261120   ;;  %v2072_v4 = vld [vmem:[%s2792_s3] sm:$0xff]   ;;  %v2073_v6 = vld [vmem:[%s2792_s3 + $0x8] sm:$0xff]   ;;  %vm806_vm2 = vcmask 64512   ;;  %s2298_s18 = smov 120  }
  0x94   : > { %s596_s5 = scalar_select %p595_p10, %s2413_s28, 1  ;;  %1883 = vmatprep.subr.bf16.mxu0 %v2296_v0  ;;  %1887 = vmatprep.mubr.msk.bf16.mxu0 %vm2297_vm0, %v2296_v0  ;;  %v1783_v11 = vld [vmem:[%s2791_s2] ss:$0 sm:$0xff]  ;;  %v2075_v24 = vld [vmem:[#allocation2 + $0x8] sm:$0xff]   ;;  %v1791_v39 = vld [vmem:[#allocation5] ss:$0 sm:$0xff] }
  0x95   : > { %v1787_v12 = vld [vmem:[%s2793_s4] ss:$0 sm:$0xff]  ;;  %vm868_vm3 = vcmask 1043456   ;;  %v913_v50 = vld [vmem:[#allocation7] sm:$0xf]  ;;  %s2299_s29 = smov 112  }
  0x96   : > { %s1782_s21 = sshll.u32 %s596_s5, 3  ;;  %v2074_v23 = vld [vmem:[#allocation2] sm:$0xff]   ;;  %v918_v51 = vsel %vm868_vm3, %v913_v50, 0  ;;  %vm1580_vm4 = vcmask 523264   ;;  %s592_s24 = sand.u32 1, %s2280_s25  }
  0x97   : > { %1884 = vmatpush3.bf16.msra.mxu0 %v2074_v23  ;;  %s1781_s23 = sshll.u32 %s592_s24, 3  ;;  %s2847_s15 = sld [smem:[#allocation25_spill]] }
  0x98   : > { %s598_s6 = scalar_lea.vmem %s2845_s20, %s1782_s21  ;;  %1885 = vmatprep.subr.bf16.mxu0 %v2296_v0  ;;  %s2300_s20 = smov 104  }
  0x99   : > { %v2070_v1 = vld [vmem:[%s2846_s19] sm:$0xff]   ;;  %v2071_v2 = vld [vmem:[%s2846_s19 + $0x8] sm:$0xff]   ;;  %s2848_s5 = sld [smem:[#allocation26_spill]]  ;;  %s1823_s21 = sshll.u32 %s2413_s28, 7 }
  0x9a   : > { %1868 = vmatpush3.bf16.msra.mxu1 %v2070_v1  ;;  %v2572_v3 = vld [vmem:[%s598_s6] sm:$0xff]  ;;  %s2849_s17 = sld [smem:[#allocation27_spill]]  ;;  %s1656_s0 = scalar_lea.sflag [#allocation4], %s592_s24 }
  0x9b   : > { %1869 = vmatprep.subr.bf16.mxu1 %v2296_v0  ;;  %v605_v5 = vpack.c.bf16 %v2572_v3, %v2572_v3  ;;  %1886 = vmatpush3.bf16.msra.mxu0 %v2075_v24  ;;  %p2850_p3 = scmp.ne.s32.totalorder %s2830_s1, 0  ;;  %s2301_s28 = smov [#allocation10]  }
  0x9c   : > { %1897 = vmatprep.subr.bf16.mxu0 %v2296_v0 }
  0x9e   : > { %1870 = vmatpush3.bf16.msra.mxu1 %v2071_v2  ;;  %1888 = vmatmul.mubr.msk.bf16.vlgmr.msra.gmra.mrb[0].mxu0 %vm625_vm1, %v605_v5 }
  0x9f   : > { %1875 = vmatprep.subr.bf16.mxu1 %v2296_v0  ;;  %1899 = vmatprep.mubr.msk.bf16.mxu0 %vm2297_vm0, %v2296_v0 }
  0xa0   : > { %s2746_s22 = scalar_lea.hbm %s2849_s17, %s1823_s21 }
  0xa1   : > { %1872 = vmatmul.mubr.msk.bf16.vlgmr.msra.gmra.mrb[0].mxu1 %vm625_vm1, %v605_v5 }
  0xa2   : > { %1876 = vmatpush3.bf16.msra.mxu1 %v2072_v4  ;;  %1879 = vmatprep.mubr.msk.bf16.mxu1 %vm2297_vm0, %v2296_v0 }
  0xa3   : > { %1877 = vmatprep.subr.bf16.mxu1 %v2296_v0 }
  0xa6   : > { %1878 = vmatpush3.bf16.msra.mxu1 %v2073_v6 }
  0xa7   : > { %1891 = vmatprep.subr.bf16.mxu1 %v2296_v0 }
  0xa9   : > { %1880 = vmatmul.mubr.msk.bf16.vlgmr.msra.gmra.mrb[4].mxu1 %vm625_vm1, %v605_v5 }
  0xaa   : > { %1893 = vmatprep.mubr.msk.bf16.mxu1 %vm2297_vm0, %v2296_v0 }
 0x171   : > { %v790_v30 = vpop.f32.mrb[0].mxu0 }
 0x172   : > { %v1889_v31 = vpop.f32.mrb[1].mxu0  ;;  %v791_v40 = vadd.f32 %v1791_v39, %v790_v30  ;;  %v1795_v39 = vld [vmem:[#allocation8] ss:$0 sm:$0xff] }
 0x173   : > { %v793_v32 = vpop.f32.mrb[2].mxu0 }
 0x174   : > { %v663_v7 = vpop.f32.mrb[0].mxu1  ;;  %v1890_v33 = vpop.f32.mrb[3].mxu0  ;;  %v2620_v41 = vpack.c.bf16 %v791_v40, %v791_v40 }
 0x175   : > { %v1873_v8 = vpop.f32.mrb[1].mxu1  ;;  %v664_v13 = vadd.f32 %v1783_v11, %v663_v7  ;;  %v1075_v7 = vld [vmem:[#allocation7 + $0x4] sm:$0xf] }
 0x176   : > { %v666_v9 = vpop.f32.mrb[2].mxu1  ;;  %v870_v42 = vsel %vm868_vm3, %v2620_v41, 0  ;;  %v1080_v8 = vsel %vm868_vm3, %v1075_v7, 0 }
 0x177   : > { %v1874_v10 = vpop.f32.mrb[3].mxu1  ;;  %v669_v18 = vmul.f32 0.35355338, %v664_v13  ;;  %1898 = vmatpush3.bf16.msra.mxu0 %v870_v42 }
 0x178   : > { %1909 = vmatprep.subr.bf16.mxu0 %v2296_v0 }
 0x179   : > { %v2604_v22 = vpack.c.bf16 %v669_v18, %v669_v18 }
 0x17c   : > { %v727_v14 = vpop.f32.mrb[4].mxu1 }
 0x17d   : > { %v728_v15 = vadd.f32 %v1787_v12, %v727_v14  ;;  %v1881_v16 = vpop.f32.mrb[5].mxu1 }
 0x17e   : > { %v730_v17 = vpop.f32.mrb[6].mxu1 }
 0x17f   : > { %v2598_v19 = vpack.c.bf16 %v728_v15, %v728_v15  ;;  %v1882_v20 = vpop.f32.mrb[7].mxu1 }
 0x181   : > { %965 = vrot.lane.b32.xlu1 %v2598_v19, %s2298_s18  ;;  %v811_v21 = vsel %vm806_vm2, %v2598_v19, 0 }
 0x182   : > { %1892 = vmatpush3.bf16.xpose.msra.mxu1 %v811_v21 }
 0x183   : > { %1903 = vmatprep.subr.bf16.mxu1 %v2296_v0 }
 0x185   : > { %962 = vrot.lane.b32.xlu1 %v2604_v22, %s2298_s18 }
 0x189   : > { %1894 = vmatmul.mubr.msk.bf16.vlgmr.msra.gmra.mrb[8].mxu1 %vm806_vm2, %v2604_v22 }
 0x18a   : > { %1905 = vmatprep.mubr.msk.bf16.mxu1 %vm2297_vm0, %v2296_v0  ;;  %1904 = vmatpush3.bf16.msra.mxu1 %v918_v51 }
 0x18b   : > { %1915 = vmatprep.subr.bf16.mxu1 %v2296_v0 }
 0x1f3   : > { %v966_v46 = vpop.permute.xlu1 %965 }
 0x1f4   : > { %v971_v48 = vsel %vm806_vm2, %v966_v46, 0 }
 0x1f7   : > { %v963_v49 = vpop.permute.xlu1 %962 }
 0x25c   : > { %v847_v25 = vpop.f32.mrb[8].mxu1 }
 0x25d   : > { %v1895_v26 = vpop.f32.mrb[9].mxu1  ;;  %v853_v27 = vsel %vm806_vm2, %v847_v25, -inf }
 0x25e   : > { %854 = vmax.xlane.f32.xlu0 %v853_v27  ;;  %v850_v28 = vpop.f32.mrb[10].mxu1 }
 0x25f   : > { %v1896_v29 = vpop.f32.mrb[11].mxu1 }
 0x2eb   : > { %v855_v34 = vpop.xlane.xlu0 %854 }
 0x2ec   : > { %v856_v35 = vsub.f32 %v847_v25, %v855_v34 }
 0x2ee   : > { %v857_v36 = vmul.f32 1.442695, %v856_v35 }
 0x2f0   : > { %2082 = vpow2.f32 %v857_v36 }
 0x2fa   : > { %v2083_v37 = vpop.eup %2082 }
 0x2fb   : > { %v859_v38 = vsel %vm806_vm2, %v2083_v37, 0.0 }
 0x2fc   : > { %860 = vadd.xlane.f32.xlu0 %v859_v38 }
 0x389   : > { %v861_v43 = vpop.xlane.xlu0 %860 }
 0x38a   : > { %2084 = vrcp.f32 %v861_v43 }
 0x394   : > { %v2085_v44 = vpop.eup %2084 }
 0x395   : > { %v863_v45 = vmul.f32 %v2085_v44, %v2083_v37 }
 0x397   : > { %v864_v47 = vpack.c.bf16 %v863_v45, %v863_v45 }
 0x399   : > { %1900 = vmatmul.mubr.msk.bf16.vlgmr.msra.gmra.mrb[4].mxu0 %vm806_vm2, %v864_v47 }
 0x39a   : > { %1910 = vmatpush3.bf16.xpose.msra.mxu0 %v971_v48  ;;  %1911 = vmatprep.mubr.msk.bf16.mxu0 %vm2297_vm0, %v2296_v0 }
 0x39b   : > { %1921 = vmatprep.subr.bf16.mxu0 %v2296_v0 }
 0x3a1   : > { %1912 = vmatmul.mubr.msk.bf16.vlgmr.msra.gmra.mrb[8].mxu0 %vm806_vm2, %v963_v49 }
 0x3a2   : > { %1923 = vmatprep.mubr.msk.bf16.mxu0 %vm2297_vm0, %v2296_v0  ;;  %1922 = vmatpush3.bf16.msra.mxu0 %v1080_v8 }
 0x3a3   : > { %1933 = vmatprep.subr.bf16.mxu0 %v2296_v0 }
 0x46c   : > { %v906_v52 = vpop.f32.mrb[4].mxu0 }
 0x46d   : > { %v912_v53 = vpack.c.bf16 %v906_v52, %v906_v52  ;;  %v1901_v54 = vpop.f32.mrb[5].mxu0 }
 0x46e   : > { %v909_v55 = vpop.f32.mrb[6].mxu0 }
 0x46f   : > { %v1902_v56 = vpop.f32.mrb[7].mxu0  ;;  %1906 = vmatmul.mubr.msk.bf16.vlgmr.msra.gmra.mrb[12].mxu1 %vm806_vm2, %v912_v53 }
 0x470   : > { %1917 = vmatprep.mubr.msk.bf16.mxu1 %vm2297_vm0, %v2296_v0 }
 0x474   : > { %v1007_v57 = vpop.f32.mrb[8].mxu0 }
 0x475   : > { %v1913_v58 = vpop.f32.mrb[9].mxu0  ;;  %v1013_v59 = vsel %vm806_vm2, %v1007_v57, -inf }
 0x476   : > { %1014 = vmax.xlane.f32.xlu0 %v1013_v59  ;;  %v1010_v60 = vpop.f32.mrb[10].mxu0 }
 0x477   : > { %v1914_v61 = vpop.f32.mrb[11].mxu0 }
 0x48c   : > { %1026 = vrot.lane.b32.xlu0 %v2620_v41, %s2298_s18  ;;  %s594_s18 = scalar_lea.vmem [#allocation10], %s1781_s23  ;;  %s2218_s23 = sshll.u32 %s2301_s28, 4  ;;  %s2219_s23 = int_to_ptr.vmem [resolvable:$false] %s2218_s23 }
 0x48d   : > { %s2220_s26 = scalar_lea.vmem %s2219_s23, 256 }
 0x490   : > { %1125 = vrot.lane.b32.xlu0 %v2598_v19, %s2299_s29 }
 0x494   : > { %1123 = vrot.lane.b32.xlu0 %v2604_v22, %s2299_s29 }
 0x503   : > { %v1015_v62 = vpop.xlane.xlu0 %1014 }
 0x504   : > { %v1016_v63 = vsub.f32 %v1007_v57, %v1015_v62 }
 0x506   : > { %v1017_v1 = vmul.f32 1.442695, %v1016_v63 }
 0x507   : > { %v1027_v2 = vpop.permute.xlu0 %1026 }
 0x508   : > { %2086 = vpow2.f32 %v1017_v1  ;;  %v1032_v4 = vsel %vm868_vm3, %v1027_v2, 0 }
 0x509   : > { %1916 = vmatpush3.bf16.msra.mxu1 %v1032_v4 }
 0x50a   : > { %1927 = vmatprep.subr.bf16.mxu1 %v2296_v0 }
 0x50b   : > { %v1126_v16 = vpop.permute.xlu0 %1125 }
 0x50c   : > { %v1131_v18 = vsel %vm806_vm2, %v1126_v16, 0 }
 0x50f   : > { %v1124_v20 = vpop.permute.xlu0 %1123 }
 0x512   : > { %v2087_v5 = vpop.eup %2086 }
 0x513   : > { %v1019_v6 = vsel %vm806_vm2, %v2087_v5, 0.0 }
 0x514   : > { %1020 = vadd.xlane.f32.xlu1 %v1019_v6 }
 0x525   : > { %1185 = vrot.lane.b32.xlu1 %v2620_v41, %s2299_s29  ;;  %s1669_s29 = sshll.u32 %s594_s18, 4  ;;  %s2748_s29 = int_to_ptr.vmem [resolvable:$true] %s1669_s29 }
 0x526   : > { %s2214_s27 = scalar_lea.vmem %s2748_s29, 128  ;;  %p2221_p8 = scmp.lt.s32.totalorder %s2748_s29, %s2219_s23 }
 0x527   : > { %p2215_p2 = scmp.ne.s32.totalorder %s2748_s29, %s2214_s27  ;;  %p2222_p11 = scmp.lt.s32.totalorder %s2220_s26, %s2214_s27 }
 0x529   : > { %p2216_p4 = pnand %p2215_p2, %p2850_p3  ;;  %p2223_p13 = por %p2222_p11, %p2221_p8 }
 0x52b   : > { %p2217_p7 = pneg %p2216_p4 }
 0x52d   : > { %p2224_p1 = pnand %p2223_p13, %p2217_p7 }
 0x542   : > { %v954_v9 = vpop.f32.mrb[12].mxu1 }
 0x543   : > { %v1907_v10 = vpop.f32.mrb[13].mxu1  ;;  %v960_v40 = vadd.f32 %v1795_v39, %v954_v9  ;;  %v1393_v9 = vld [vmem:[#allocation7 + $0xc] sm:$0xf]  ;;  %v2077_v39 = vld [vmem:[%s2798_s9 + $0x8] sm:$0xff]  }
 0x544   : > { %v957_v11 = vpop.f32.mrb[14].mxu1  ;;  %v1398_v10 = vsel %vm868_vm3, %v1393_v9, 0 }
 0x545   : > { %v1908_v12 = vpop.f32.mrb[15].mxu1 }
 0x5a1   : > { %v1021_v13 = vpop.xlane.xlu1 %1020 }
 0x5a2   : > { %2088 = vrcp.f32 %v1021_v13 }
 0x5a5   : > { %v1186_v21 = vpop.permute.xlu1 %1185 }
 0x5a6   : > { %v1191_v27 = vsel %vm868_vm3, %v1186_v21, 0 }
 0x5ac   : > { %v2089_v14 = vpop.eup %2088 }
 0x5ad   : > { %v1023_v15 = vmul.f32 %v2089_v14, %v2087_v5 }
 0x5af   : > { %v1024_v17 = vpack.c.bf16 %v1023_v15, %v1023_v15 }
 0x5b1   : > { %1918 = vmatmul.mubr.msk.bf16.vlgmr.msra.gmra.mrb[16].mxu1 %vm806_vm2, %v1024_v17 }
 0x5b2   : > { %1928 = vmatpush3.bf16.xpose.msra.mxu1 %v1131_v18  ;;  %1929 = vmatprep.mubr.msk.bf16.mxu1 %vm2297_vm0, %v2296_v0 }
 0x5b3   : > { %1939 = vmatprep.subr.bf16.mxu1 %v2296_v0 }
 0x5b9   : > { %1930 = vmatmul.mubr.msk.bf16.vlgmr.msra.gmra.mrb[20].mxu1 %vm806_vm2, %v1124_v20 }
 0x5ba   : > { %1941 = vmatprep.mubr.msk.bf16.mxu1 %vm2297_vm0, %v2296_v0 }
 0x684   : > { %v1068_v23 = vpop.f32.mrb[16].mxu1 }
 0x685   : > { %v1074_v24 = vpack.c.bf16 %v1068_v23, %v1068_v23  ;;  %v1919_v25 = vpop.f32.mrb[17].mxu1 }
 0x686   : > { %v1071_v26 = vpop.f32.mrb[18].mxu1 }
 0x687   : > { %v1920_v28 = vpop.f32.mrb[19].mxu1  ;;  %1924 = vmatmul.mubr.msk.bf16.vlgmr.msra.gmra.mrb[12].mxu0 %vm806_vm2, %v1074_v24 }
 0x688   : > { %1934 = vmatpush3.bf16.msra.mxu0 %v1191_v27  ;;  %1935 = vmatprep.mubr.msk.bf16.mxu0 %vm2297_vm0, %v2296_v0 }
 0x689   : > { %1945 = vmatprep.subr.bf16.mxu0 %v2296_v0 }
 0x68c   : > { %v1167_v29 = vpop.f32.mrb[20].mxu1 }
 0x68d   : > { %v1931_v30 = vpop.f32.mrb[21].mxu1  ;;  %v1173_v31 = vsel %vm806_vm2, %v1167_v29, -inf }
 0x68e   : > { %1174 = vmax.xlane.f32.xlu0 %v1173_v31  ;;  %v1170_v32 = vpop.f32.mrb[22].mxu1 }
 0x68f   : > { %v1932_v33 = vpop.f32.mrb[23].mxu1 }
 0x71b   : > { %v1175_v34 = vpop.xlane.xlu0 %1174 }
 0x71c   : > { %v1176_v35 = vsub.f32 %v1167_v29, %v1175_v34 }
 0x71e   : > { %v1177_v36 = vmul.f32 1.442695, %v1176_v35 }
 0x720   : > { %2090 = vpow2.f32 %v1177_v36 }
 0x72a   : > { %v2091_v37 = vpop.eup %2090 }
 0x72b   : > { %v1179_v38 = vsel %vm806_vm2, %v2091_v37, 0.0 }
 0x72c   : > { %1180 = vadd.xlane.f32.xlu1 %v1179_v38  ;;  %v2076_v38 = vld [vmem:[%s2798_s9] sm:$0xff]  }
 0x73d   : > { %1284 = vrot.lane.b32.xlu1 %v2598_v19, %s2300_s20 }
 0x741   : > { %1282 = vrot.lane.b32.xlu1 %v2604_v22, %s2300_s20  ;;  %v1234_v22 = vld [vmem:[#allocation7 + $0x8] sm:$0xf] }
 0x742   : > { %v1239_v53 = vsel %vm868_vm3, %v1234_v22, 0  ;;  %v1810_v22 = vld [vmem:[%s2799_s10] ss:$0 sm:$0xff] }
 0x743   : > { %1940 = vmatpush3.bf16.msra.mxu1 %v1239_v53 }
 0x744   : > { %1951 = vmatprep.subr.bf16.mxu1 %v2296_v0 }
 0x75a   : > { %v1116_v42 = vpop.f32.mrb[12].mxu0 }
 0x75b   : > { %v1122_v43 = vadd.f32 %v1116_v42, %v960_v40  ;;  %v1925_v44 = vpop.f32.mrb[13].mxu0  ;;  %v2079_v40 = vld [vmem:[%s2800_s11 + $0x8] sm:$0xff]  }
 0x75c   : > { %v1119_v45 = vpop.f32.mrb[14].mxu0 }
 0x75d   : > { %v1926_v46 = vpop.f32.mrb[15].mxu0 }
 0x75e   : > { %v1808_v46 = vld [vmem:[%s2802_s13] ss:$0 sm:$0xff] }
 0x7b9   : > { %v1181_v47 = vpop.xlane.xlu1 %1180 }
 0x7ba   : > { %2092 = vrcp.f32 %v1181_v47 }
 0x7bd   : > { %v1285_v50 = vpop.permute.xlu1 %1284 }
 0x7be   : > { %v1290_v52 = vsel %vm806_vm2, %v1285_v50, 0 }
 0x7c1   : > { %v1283_v19 = vpop.permute.xlu1 %1282 }
 0x7c4   : > { %v2093_v48 = vpop.eup %2092 }
 0x7c5   : > { %v1183_v49 = vmul.f32 %v2093_v48, %v2091_v37  ;;  %v1809_v48 = vld [vmem:[%s2803_s14] ss:$0 sm:$0xff] }
 0x7c7   : > { %v1184_v51 = vpack.c.bf16 %v1183_v49, %v1183_v49 }
 0x7c9   : > { %1936 = vmatmul.mubr.msk.bf16.vlgmr.msra.gmra.mrb[16].mxu0 %vm806_vm2, %v1184_v51 }
 0x7ca   : > { %1946 = vmatpush3.bf16.xpose.msra.mxu0 %v1290_v52  ;;  %1947 = vmatprep.mubr.msk.bf16.mxu0 %vm2297_vm0, %v2296_v0  ;;  %v2080_v52 = vld [vmem:[%s2800_s11 + $0x10] sm:$0xff]  }
 0x7cb   : > { %1957 = vmatprep.subr.bf16.mxu0 %v2296_v0 }
 0x7d1   : > { %1948 = vmatmul.mubr.msk.bf16.vlgmr.msra.gmra.mrb[20].mxu0 %vm806_vm2, %v1283_v19  ;;  %v2081_v19 = vld [vmem:[%s2800_s11 + $0x18] sm:$0xff]  }
 0x7d2   : > { %1959 = vmatprep.mubr.msk.bf16.mxu0 %vm2297_vm0, %v2296_v0  ;;  %1958 = vmatpush3.bf16.msra.mxu0 %v1398_v10 }
 0x7d3   : > { %1971 = vmatprep.subr.bf16.mxu0 %v2296_v0 }
 0x89c   : > { %v1227_v54 = vpop.f32.mrb[16].mxu0 }
 0x89d   : > { %v1233_v55 = vpack.c.bf16 %v1227_v54, %v1227_v54  ;;  %v1937_v56 = vpop.f32.mrb[17].mxu0 }
 0x89e   : > { %v1230_v57 = vpop.f32.mrb[18].mxu0 }
 0x89f   : > { %v1938_v58 = vpop.f32.mrb[19].mxu0  ;;  %1942 = vmatmul.mubr.msk.bf16.vlgmr.msra.gmra.mrb[24].mxu1 %vm806_vm2, %v1233_v55 }
 0x8a0   : > { %1953 = vmatprep.mubr.msk.bf16.mxu1 %vm2297_vm0, %v2296_v0 }
 0x8a4   : > { %v1326_v59 = vpop.f32.mrb[20].mxu0 }
 0x8a5   : > { %v1949_v60 = vpop.f32.mrb[21].mxu0  ;;  %v1332_v61 = vsel %vm806_vm2, %v1326_v59, -inf }
 0x8a6   : > { %1333 = vmax.xlane.f32.xlu0 %v1332_v61  ;;  %v1329_v62 = vpop.f32.mrb[22].mxu0 }
 0x8a7   : > { %v1950_v63 = vpop.f32.mrb[23].mxu0 }
 0x8bc   : > { %1344 = vrot.lane.b32.xlu0 %v2620_v41, %s2300_s20 }
 0x933   : > { %v1334_v1 = vpop.xlane.xlu0 %1333 }
 0x934   : > { %v1335_v2 = vsub.f32 %v1326_v59, %v1334_v1 }
 0x936   : > { %v1336_v4 = vmul.f32 1.442695, %v1335_v2 }
 0x937   : > { %v1345_v5 = vpop.permute.xlu0 %1344 }
 0x938   : > { %2094 = vpow2.f32 %v1336_v4  ;;  %v1350_v6 = vsel %vm868_vm3, %v1345_v5, 0 }
 0x939   : > { %1952 = vmatpush3.bf16.msra.mxu1 %v1350_v6 }
 0x93a   : > { %1963 = vmatprep.subr.bf16.mxu1 %v2296_v0 }
 0x942   : > { %v2095_v7 = vpop.eup %2094 }
 0x943   : > { %v1338_v8 = vsel %vm806_vm2, %v2095_v7, 0.0 }
 0x944   : > { %1339 = vadd.xlane.f32.xlu1 %v1338_v8 }
 0x972   : > { %v1275_v41 = vpop.f32.mrb[24].mxu1 }
 0x973   : > { %v1281_v11 = vadd.f32 %v1275_v41, %v1122_v43  ;;  %v1943_v12 = vpop.f32.mrb[25].mxu1 }
 0x974   : > { %v1278_v13 = vpop.f32.mrb[26].mxu1 }
 0x975   : > { %v1944_v14 = vpop.f32.mrb[27].mxu1  ;;  %v1820_v13 = vld [vmem:[%s2847_s15] ss:$0 sm:$0xff] }
 0x9d1   : > { %v1340_v15 = vpop.xlane.xlu1 %1339 }
 0x9d2   : > { %2096 = vrcp.f32 %v1340_v15  ;;  %v1821_v15 = vld [vmem:[%s2848_s5] ss:$0 sm:$0xff] }
 0x9dc   : > { %v2097_v16 = vpop.eup %2096 }
 0x9dd   : > { %v1342_v17 = vmul.f32 %v2097_v16, %v2095_v7 }
 0x9df   : > { %v1343_v18 = vpack.c.bf16 %v1342_v17, %v1342_v17 }
 0x9e1   : > { %1954 = vmatmul.mubr.msk.bf16.vlgmr.msra.gmra.mrb[28].mxu1 %vm806_vm2, %v1343_v18 }
 0x9e2   : > { %1967 = vmatprep.mubr.msk.bf16.mxu1 %vm2297_vm0, %v2296_v0  ;;  %1964 = vmatpush3.bf16.msra.mxu1 %v2076_v38 }
 0x9e3   : > { %1965 = vmatprep.subr.bf16.mxu1 %v2296_v0 }
 0x9e6   : > { %1966 = vmatpush3.bf16.msra.mxu1 %v2077_v39 }
 0xab4   : > { %v1386_v20 = vpop.f32.mrb[28].mxu1 }
 0xab5   : > { %v1392_v21 = vpack.c.bf16 %v1386_v20, %v1386_v20  ;;  %v1955_v23 = vpop.f32.mrb[29].mxu1 }
 0xab6   : > { %v1389_v24 = vpop.f32.mrb[30].mxu1 }
 0xab7   : > { %v1956_v25 = vpop.f32.mrb[31].mxu1  ;;  %1960 = vmatmul.mubr.msk.bf16.vlgmr.msra.gmra.mrb[24].mxu0 %vm806_vm2, %v1392_v21 }
 0xab8   : > { %1979 = vmatprep.mubr.msk.bf16.mxu0 %vm2297_vm0, %v2296_v0 }
 0xb8a   : > { %v1434_v26 = vpop.f32.mrb[24].mxu0 }
 0xb8b   : > { %v1440_v27 = vadd.f32 %v1434_v26, %v1281_v11  ;;  %v1961_v28 = vpop.f32.mrb[25].mxu0 }
 0xb8c   : > { %v1437_v29 = vpop.f32.mrb[26].mxu0 }
 0xb8d   : > { %v1962_v30 = vpop.f32.mrb[27].mxu0  ;;  %v1441_v31 = vadd.f32 %v1440_v27, %v2572_v3  ;;  %v2078_v3 = vld [vmem:[%s2800_s11] sm:$0xff]  }
 0xb8e   : > { %1972 = vmatpush3.bf16.msra.mxu0 %v2078_v3 }
 0xb8f   : > { %v1442_v32 = vsel %vm625_vm1, %v1441_v31, 0.0  ;;  %1973 = vmatprep.subr.bf16.mxu0 %v2296_v0 }
 0xb90   : > { %1443 = vadd.xlane.f32.xlu0 %v1442_v32 }
 0xb92   : > { %1974 = vmatpush3.bf16.msra.mxu0 %v2079_v40 }
 0xb93   : > { %1975 = vmatprep.subr.bf16.mxu0 %v2296_v0 }
 0xb96   : > { %1976 = vmatpush3.bf16.msra.mxu0 %v2080_v52 }
 0xb97   : > { %1977 = vmatprep.subr.bf16.mxu0 %v2296_v0  ;;  %v1814_v0 = vld [vmem:[%s2801_s12] ss:$0 sm:$0xff] }
 0xb9a   : > { %1978 = vmatpush3.bf16.msra.mxu0 %v2081_v19 }
 0xc1d   : > { %v1444_v33 = vpop.xlane.xlu0 %1443 }
 0xc1e   : > { %v1446_v34 = vmul.f32 0.03125, %v1444_v33 }
 0xc20   : > { %v1447_v35 = vsub.f32 %v1441_v31, %v1446_v34 }
 0xc22   : > { %v1448_v36 = vmul.f32 %v1447_v35, %v1447_v35 }
 0xc24   : > { %v1449_v37 = vsel %vm625_vm1, %v1448_v36, 0.0 }
 0xc25   : > { %1450 = vadd.xlane.f32.xlu1 %v1449_v37 }
 0xcb2   : > { %v1451_v42 = vpop.xlane.xlu1 %1450 }
 0xcb3   : > { %v1452_v43 = vmul.f32 0.03125, %v1451_v42 }
 0xcb5   : > { %v1453_v44 = vadd.f32 1e-05, %v1452_v43 }
 0xcb7   : > { %2098 = vrsqrt.f32 %v1453_v44 }
 0xcc1   : > { %v2099_v45 = vpop.eup %2098 }
 0xcc2   : > { %v1455_v47 = vmul.f32 %v2099_v45, %v1447_v35 }
 0xcc4   : > { %v1463_v49 = vmul.f32 %v1808_v46, %v1455_v47 }
 0xcc6   : > { %v1471_v50 = vadd.f32 %v1809_v48, %v1463_v49 }
 0xcc8   : > { %v1476_v51 = vpack.c.bf16 %v1471_v50, %v1471_v50 }
 0xcca   : > { %1968 = vmatmul.mubr.msk.bf16.vlgmr.msra.gmra.mrb[32].mxu1 %vm625_vm1, %v1476_v51 }
 0xd9d   : > { %v1533_v53 = vpop.f32.mrb[32].mxu1 }
 0xd9e   : > { %v1534_v54 = vadd.f32 %v1810_v22, %v1533_v53  ;;  %v1969_v55 = vpop.f32.mrb[33].mxu1 }
 0xd9f   : > { %v1536_v56 = vpop.f32.mrb[34].mxu1 }
 0xda0   : > { %v1539_v57 = vmax.f32 %v1534_v54, 0.0  ;;  %v1970_v58 = vpop.f32.mrb[35].mxu1 }
 0xda2   : > { %v1548_v59 = vpack.c.bf16 %v1539_v57, %v1539_v57 }
 0xda4   : > { %1980 = vmatmul.mubr.msk.bf16.vlgmr.msra.gmra.mrb[28].mxu0 %vm1580_vm4, %v1548_v59 }
 0xe77   : > { %v1618_v60 = vpop.f32.mrb[28].mxu0 }
 0xe78   : > { %v1619_v61 = vadd.f32 %v1814_v0, %v1618_v60  ;;  %v1981_v62 = vpop.f32.mrb[29].mxu0 }
 0xe79   : > { %v1621_v63 = vpop.f32.mrb[30].mxu0 }
 0xe7a   : > { %v1982_v1 = vpop.f32.mrb[31].mxu0  ;;  %v1624_v2 = vadd.f32 %v1619_v61, %v1471_v50 }
 0xe7c   : > { %v1625_v4 = vsel %vm625_vm1, %v1624_v2, 0.0 }
 0xe7d   : > { %1626 = vadd.xlane.f32.xlu1 %v1625_v4 }
 0xf0a   : > { %v1627_v5 = vpop.xlane.xlu1 %1626 }
 0xf0b   : > { %v1628_v6 = vmul.f32 0.03125, %v1627_v5 }
 0xf0d   : > { %v1629_v7 = vsub.f32 %v1624_v2, %v1628_v6 }
 0xf0f   : > { %v1630_v8 = vmul.f32 %v1629_v7, %v1629_v7 }
 0xf11   : > { %v1631_v9 = vsel %vm625_vm1, %v1630_v8, 0.0 }
 0xf12   : > { %1632 = vadd.xlane.f32.xlu1 %v1631_v9 }
 0xf9f   : > { %v1633_v10 = vpop.xlane.xlu1 %1632 }
 0xfa0   : > { %v1634_v41 = vmul.f32 0.03125, %v1633_v10 }
 0xfa2   : > { %v1635_v11 = vadd.f32 1e-05, %v1634_v41 }
 0xfa4   : > { %2100 = vrsqrt.f32 %v1635_v11 }
 0xfae   : > { %v2101_v12 = vpop.eup %2100 }
 0xfaf   : > { %v1637_v14 = vmul.f32 %v2101_v12, %v1629_v7 }
 0xfb1   : > { %v1645_v16 = vmul.f32 %v1820_v13, %v1637_v14 }
 0xfb3   : > { %v1653_v17 = vadd.f32 %v1821_v15, %v1645_v16 }
 0xfb5   : > { %1654 = vst.msk [vmem:[%s594_s18] sm:$0xff] %vm625_vm1, %v1653_v17 }
 0xfb6   : > { %2227 = shalt.err (!%p2224_p1)
}
 0xfb7   : > { %s2228_s24 = scalar_lea.hbm %s2746_s22, 128  ;;  %s2232_s30 = scalar_lea.hbm %s2849_s17, 256 }
 0xfb8   : > { %p2229_p0 = scmp.ne.s32.totalorder %s2746_s22, %s2228_s24  ;;  %p2233_p9 = scmp.lt.u32.totalorder %s2746_s22, %s2849_s17 }
 0xfb9   : > { %p2234_p12 = scmp.lt.u32.totalorder %s2232_s30, %s2228_s24  ;;  %p2236_p2 = scmp.lt.u32.totalorder %s2228_s24, %s2746_s22 }
 0xfba   : > { %p2230_p6 = pnand %p2229_p0, %p2850_p3 }
 0xfbb   : > { %p2235_p10 = por %p2234_p12, %p2233_p9 }
 0xfbc   : > { %p2231_p5 = pneg %p2230_p6 }
 0xfbd   : > { %p2237_p4 = por %p2236_p2, %p2235_p10 }
 0xfbf   : > { %p2238_p7 = pnand %p2237_p4, %p2231_p5 }
 0xfc1   : > { %2241 = shalt.err (!%p2238_p7)
}
 0xfc2   : > { %1999 = dma.vmem_to_hbm [thread:$0]  (%p2850_p3), %s2748_s29, 128, %s2746_s22, %s1656_s0  }
 0xfc3 PF: > { %s2851_s18 = sld [smem:[#allocation17_spill]]  ;;  %s2852_s20 = sld [smem:[#allocation15_spill]] }
 0xfc4   : > { %s2853_s6 = sld [smem:[#allocation20_spill]] }
 0xfc9   : > { %p2026_p8 = scmp.ge.s32.totalorder %s2851_s18, 2  ;;  %s1681_s27 = sand.u32 1, %s2852_s20  }
 0xfca   : > { %p2854_p11 = scmp.ne.s32.totalorder %s2853_s6, 0  ;;  %s1682_s28 = scalar_lea.sflag [#allocation4], %s1681_s27 }
 0xfcc   : > { %p2015_p13 = pnand %p2026_p8, %p2854_p11 }
 0xfce   : > { %2271 = dma.done.wait (!%p2015_p13), %s1682_s28, 128  }
 0xfcf   : > { %2273 = vsyncadd (!%p2015_p13), %s1682_s28, 4294967168  ;;  %s2855_s27 = sld [smem:[#allocation18_spill]]  ;;  %s2856_s23 = sld [smem:[#allocation16_spill]] }
 0xfd0   : > { %s2857_s26 = sld [smem:[#allocation19_spill]]  ;;  %s2858_s24 = smov %s2280_s25 }
 0xfd5   : > { %p30_p1 = scmp.ge.s32.totalorder %s2855_s27, 4   ;;  %s2859_s25 = smov %s2856_s23 }
 0xfd7   :  { %32 = sbr.rel (!%p30_p1) target bundleno = 14 (0xe), region = 140 }
 0xfde   :  { %1687 = vsyncpa [#allocation3], 1 }
 0xfdf   :  { %1689 = vsyncpa [#allocation3 + $0x1], 1 }
 0xfe0   :  { %1690 = vsyncpa [#allocation6], 1 }
 0xfe1   :  { %1691 = vsyncpa [#allocation9], 1 }
 0xfe2   :  { %1692 = vsyncpa [#allocation4], 1 }
 0xfe3   :  { %1694 = vsyncpa [#allocation4 + $0x1], 1 }

</bundles_post_ra>
